<compile_context>
chip_gen: v5e
topology: v5e:2x2
jax: 0.10.0
libtpu: 0.0.40
codegen_flags: <defaults>
</compile_context>

<pallas_src>
import functools

import jax
import jax.numpy as jnp
from jax.experimental import pallas as pl
from jax.experimental.pallas import tpu as pltpu


def adamole_kernel(x_ref, wb_ref, bb_ref, wgt_ref, bgt_ref, a_ref, b_ref,
                   out_ref, h_scratch, *, num_experts, rank, scaling,
                   max_threshold):
    """One (token-tile i, d_out-tile j) grid step.

    j is the inner ("arbitrary") grid axis. Gating + the all-expert low-rank
    projection depend only on the token tile, so they are computed once per i
    (at j == 0) and cached in VMEM scratch; every j step then runs two big
    lane-dense MXU matmuls (base + expert mixture).
    """
    j = pl.program_id(1)
    x = x_ref[...]                                              # (TM, D_in)

    @pl.when(j == 0)
    def _gating_and_hidden():
        # Fused gate|threshold matmul (wt folded into wg, lane padded).
        logits = jnp.dot(x, wgt_ref[...], preferred_element_type=jnp.float32)
        logits = logits + bgt_ref[...].astype(jnp.float32)      # (TM, E_pad)

        gl = logits[:, :num_experts]
        gl = gl - jnp.max(gl, axis=-1, keepdims=True)
        eg = jnp.exp(gl)
        gate = eg / jnp.sum(eg, axis=-1, keepdims=True)         # (TM, E)

        thr = jax.nn.sigmoid(logits[:, num_experts:num_experts + 1])
        thr = thr * max_threshold                               # (TM, 1)

        adapted = gate - thr
        w = adapted * (adapted >= 0.0).astype(jnp.float32)
        wsum = jnp.sum(w, axis=-1, keepdims=True)
        wsum = jnp.where(wsum == 0.0, jnp.ones_like(wsum), wsum)
        w = (w / wsum) * scaling                                # (TM, E)

        # All experts' down-projection in ONE matmul (contraction D_in,
        # output E*r) instead of E tiny rank-r matmuls.
        h = jnp.dot(x, a_ref[...], preferred_element_type=jnp.float32)
        # Scale each expert's r-wide slice by its normalized gate weight (VPU).
        parts = [h[:, e * rank:(e + 1) * rank] * w[:, e:e + 1]
                 for e in range(num_experts)]
        h_scratch[...] = jnp.concatenate(parts, axis=-1).astype(h_scratch.dtype)

    # Base linear + mixed expert up-projection for this D_out tile.
    acc = jnp.dot(x, wb_ref[...], preferred_element_type=jnp.float32)
    acc = acc + bb_ref[...].astype(jnp.float32)
    acc = acc + jnp.dot(h_scratch[...], b_ref[...],
                        preferred_element_type=jnp.float32)
    out_ref[...] = acc.astype(out_ref.dtype)


def linear_adamole_forward(x, params, *, num_experts, scaling, max_threshold,
                           tile_m=128, tile_n=512, compute_dtype=None):
    """x: (..., D_in) -> (..., D_out).  Set compute_dtype=jnp.bfloat16 on
    v6e/v7x for ~2x MXU throughput (accumulation stays f32)."""
    d_in = x.shape[-1]
    d_out = params["wb"].shape[1]
    rank = params["a"].shape[-1]
    lead = x.shape[:-1]

    if compute_dtype is not None:
        x = x.astype(compute_dtype)
        params = jax.tree_util.tree_map(lambda p: p.astype(compute_dtype),
                                        params)
    dtype = x.dtype
    itemsize = jnp.dtype(dtype).itemsize

    # --- assemble fused / padded weight layouts (host side, once per call) --
    e_pad = max(8, -(-(num_experts + 1) // 8) * 8)
    wgt = jnp.concatenate([params["wg"], params["wt"]], axis=1)
    wgt = jnp.pad(wgt, ((0, 0), (0, e_pad - (num_experts + 1))))
    bgt = jnp.concatenate(
        [jnp.zeros((1, num_experts), dtype), params["bt"]], axis=1)
    bgt = jnp.pad(bgt, ((0, 0), (0, e_pad - (num_experts + 1))))
    # A stacked (E, D_in, r) -> (D_in, E*r);  B stacked (E, r, D_out) -> (E*r, D_out)
    er = num_experts * rank
    a_all = jnp.transpose(params["a"], (1, 0, 2)).reshape(d_in, er)
    b_all = params["b"].reshape(er, d_out)

    # --- token tiling: pad N up to a multiple of tile_m ---------------------
    tile_m = max(8, -(-tile_m // 8) * 8)
    x2 = x.reshape(-1, d_in)
    n = x2.shape[0]
    n_pad = -(-n // tile_m) * tile_m
    if n_pad != n:
        x2 = jnp.pad(x2, ((0, n_pad - n), (0, 0)))

    # --- D_out tiling: keep output blocks lane-dense ------------------------
    if tile_n > d_out or d_out % tile_n != 0 or tile_n % 128 != 0:
        tile_n = d_out                       # single full-width tile
    num_i = n_pad // tile_m
    num_j = d_out // tile_n

    # VMEM budget (inputs/outputs are double-buffered by the pipeline).
    block_bytes = (tile_m * d_in + d_in * tile_n + tile_n + d_in * e_pad
                   + e_pad + d_in * er + er * tile_n + tile_m * tile_n) * itemsize
    scratch_bytes = tile_m * er * itemsize
    vmem_limit = min(64 * 2**20,
                     max(32 * 2**20, int(2.25 * block_bytes) + scratch_bytes))

    cost = pl.CostEstimate(
        flops=int(2 * n_pad * d_in * (d_out + e_pad + er)
                  + 2 * n_pad * er * d_out),
        transcendentals=int(n_pad * (num_experts + 1)),
        bytes_accessed=int(
            x2.size * itemsize + n_pad * d_out * itemsize
            + num_i * (d_in * d_out + d_out + er * d_out) * itemsize
            + (d_in * e_pad + e_pad + d_in * er) * itemsize),
    )

    kernel = functools.partial(
        adamole_kernel, num_experts=num_experts, rank=rank,
        scaling=float(scaling), max_threshold=float(max_threshold))

    out = pl.pallas_call(
        kernel,
        out_shape=jax.ShapeDtypeStruct((n_pad, d_out), dtype),
        grid_spec=pltpu.PrefetchScalarGridSpec(
            num_scalar_prefetch=0,
            grid=(num_i, num_j),
            in_specs=[
                pl.BlockSpec((tile_m, d_in), lambda i, j: (i, 0)),   # x (resident over j)
                pl.BlockSpec((d_in, tile_n), lambda i, j: (0, j)),   # Wb^T tile
                pl.BlockSpec((1, tile_n), lambda i, j: (0, j)),      # base bias tile
                pl.BlockSpec((d_in, e_pad), lambda i, j: (0, 0)),    # fused gate|thr W
                pl.BlockSpec((1, e_pad), lambda i, j: (0, 0)),       # fused gate|thr b
                pl.BlockSpec((d_in, er), lambda i, j: (0, 0)),       # all-expert A
                pl.BlockSpec((er, tile_n), lambda i, j: (0, j)),     # all-expert B tile
            ],
            out_specs=pl.BlockSpec((tile_m, tile_n), lambda i, j: (i, j)),
            scratch_shapes=[pltpu.VMEM((tile_m, er), dtype)],
        ),
        compiler_params=pltpu.CompilerParams(
            dimension_semantics=("parallel", "arbitrary"),
            vmem_limit_bytes=vmem_limit),
        cost_estimate=cost,
    )(x2, params["wb"], params["bb"], wgt, bgt, a_all, b_all)

    return out[:n].reshape(*lead, d_out)


def reference_forward(x, params, *, num_experts, scaling, max_threshold):
    """Pure-JAX (f32) reference mirroring the PyTorch forward."""
    d_in = x.shape[-1]
    lead = x.shape[:-1]
    xf = x.reshape(-1, d_in).astype(jnp.float32)
    p = {k: v.astype(jnp.float32) for k, v in params.items()}
    base = xf @ p["wb"] + p["bb"]
    gate = jax.nn.softmax(xf @ p["wg"], axis=-1)
    thr = jax.nn.sigmoid(xf @ p["wt"] + p["bt"]) * max_threshold
    adapted = gate - thr
    sel = (adapted >= 0).astype(jnp.float32)
    w = adapted * sel
    wsum = jnp.sum(w, axis=-1, keepdims=True)
    wsum = jnp.where(wsum == 0, jnp.ones_like(wsum), wsum)
    w = w / wsum
    acc = jnp.zeros_like(base)
    for i in range(num_experts):
        y = (xf @ p["a"][i]) @ p["b"][i] * scaling
        acc = acc + w[:, i:i + 1] * y
    return (base + acc).reshape(*lead, base.shape[-1])


if __name__ == "__main__":
    # Small shapes consistent with the module: base nn.Linear(D_in, D_out),
    # num_experts LoRA experts of rank r, gating Linear(D_in, E, bias=False),
    # threshold Linear(D_in, 1).
    batch, seq, d_in, d_out = 2, 8, 32, 32
    num_experts, rank, alpha = 4, 8, 16
    scaling = alpha / rank
    max_threshold = 1.0 / num_experts   # default when max_threshold is None

    key = jax.random.PRNGKey(0)
    ks = jax.random.split(key, 8)
    x = jax.random.normal(ks[0], (batch, seq, d_in), jnp.float32)

    # NOTE: the reference init zeroes lora_B (MoE path would be identically 0);
    # deterministic random weights are used so the MoE path is exercised.
    params = {
        # base layer weight is (D_out, D_in) in torch; stored transposed.
        "wb": jax.random.normal(ks[1], (d_in, d_out), jnp.float32) * 0.1,
        "bb": jax.random.normal(ks[2], (1, d_out), jnp.float32) * 0.1,
        "wg": jax.random.normal(ks[3], (d_in, num_experts), jnp.float32) * 0.1,
        "wt": jax.random.normal(ks[4], (d_in, 1), jnp.float32) * 0.1,
        "bt": jax.random.normal(ks[5], (1, 1), jnp.float32) * 0.1,
        # lora_A[i]: (r, D_in) torch -> (D_in, r); lora_B[i]: (D_out, r) -> (r, D_out)
        "a": jax.random.normal(ks[6], (num_experts, d_in, rank), jnp.float32) * 0.1,
        "b": jax.random.normal(ks[7], (num_experts, rank, d_out), jnp.float32) * 0.1,
    }

    ref = reference_forward(
        x, params, num_experts=num_experts, scaling=scaling,
        max_threshold=max_threshold)

    # f32 path (exact check).
    out = linear_adamole_forward(
        x, params, num_experts=num_experts, scaling=scaling,
        max_threshold=max_threshold, tile_m=128, tile_n=512)
    out = jax.block_until_ready(out)
    assert out.shape == (batch, seq, d_out)
    assert jnp.allclose(out, ref, atol=1e-4, rtol=1e-4), "f32 mismatch vs ref"

    # bf16 compute path (v6e/v7x recommendation): f32 MXU accumulation, loose tol.
    out_bf16 = linear_adamole_forward(
        x, params, num_experts=num_experts, scaling=scaling,
        max_threshold=max_threshold, tile_m=128, tile_n=512,
        compute_dtype=jnp.bfloat16)
    out_bf16 = jax.block_until_ready(out_bf16)
    assert jnp.allclose(out_bf16.astype(jnp.float32), ref,
                        atol=1e-1, rtol=1e-1), "bf16 mismatch vs ref"

    print("KERNEL_OK")
</pallas_src>

<mosaic_0001>
module attributes {stable_mosaic.version = 11 : i64} {
  func.func @adamole_kernel(%arg0: i32, %arg1: i32, %arg2: memref<128x32xf32, #tpu.memory_space<vmem>>, %arg3: memref<32x32xf32, #tpu.memory_space<vmem>>, %arg4: memref<1x32xf32, #tpu.memory_space<vmem>>, %arg5: memref<32x8xf32, #tpu.memory_space<vmem>>, %arg6: memref<1x8xf32, #tpu.memory_space<vmem>>, %arg7: memref<32x32xf32, #tpu.memory_space<vmem>>, %arg8: memref<32x32xf32, #tpu.memory_space<vmem>>, %arg9: memref<128x32xf32, #tpu.memory_space<vmem>>, %arg10: memref<128x32xf32, #tpu.memory_space<vmem>>) attributes {dimension_semantics = [#tpu.dimension_semantics<parallel>, #tpu.dimension_semantics<arbitrary>], iteration_bounds = array<i64: 1, 1>, scalar_prefetch = 0 : i64, scratch_operands = 1 : i64, tpu.core_type = #tpu.core_type<tc>, window_params = [{transform_indices = @transform_0, window_bounds = array<i64: 128, 32>}, {transform_indices = @transform_1, window_bounds = array<i64: 32, 32>}, {transform_indices = @transform_2, window_bounds = array<i64: 1, 32>}, {pipeline_mode = #tpu.pipeline_mode<synchronous>, transform_indices = @transform_3, window_bounds = array<i64: 32, 8>}, {pipeline_mode = #tpu.pipeline_mode<synchronous>, transform_indices = @transform_4, window_bounds = array<i64: 1, 8>}, {pipeline_mode = #tpu.pipeline_mode<synchronous>, transform_indices = @transform_5, window_bounds = array<i64: 32, 32>}, {transform_indices = @transform_6, window_bounds = array<i64: 32, 32>}, {transform_indices = @transform_7, window_bounds = array<i64: 128, 32>}]} {
    %c0 = arith.constant 0 : index
    %c0_0 = arith.constant 0 : index
    %0 = vector.load %arg2[%c0, %c0_0] : memref<128x32xf32, #tpu.memory_space<vmem>>, vector<128x32xf32>
    %c0_i32 = arith.constant 0 : i32
    %1 = arith.cmpi eq, %arg1, %c0_i32 : i32
    %2 = arith.extui %1 : i1 to i32
    %c0_i32_1 = arith.constant 0 : i32
    %3 = arith.cmpi ne, %2, %c0_i32_1 : i32
    scf.if %3 {
      %c0_13 = arith.constant 0 : index
      %c0_14 = arith.constant 0 : index
      %14 = vector.load %arg5[%c0_13, %c0_14] : memref<32x8xf32, #tpu.memory_space<vmem>>, vector<32x8xf32>
      %cst_15 = arith.constant dense<0.000000e+00> : vector<128x8xf32>
      %15 = tpu.matmul %0, %14, %cst_15 {dimension_numbers = #tpu.dot_dimension_numbers<[1], [0], [0], [1], [0, 0, 1, 1], [], []>} : vector<128x32xf32>, vector<32x8xf32>, vector<128x8xf32> -> vector<128x8xf32>
      %c0_16 = arith.constant 0 : index
      %c0_17 = arith.constant 0 : index
      %16 = vector.load %arg6[%c0_16, %c0_17] : memref<1x8xf32, #tpu.memory_space<vmem>>, vector<1x8xf32>
      %17 = vector.broadcast %16 : vector<1x8xf32> to vector<128x8xf32>
      %18 = arith.addf %15, %17 : vector<128x8xf32>
      %19 = vector.extract_strided_slice %18 {offsets = [0, 0], sizes = [128, 4], strides = [1, 1]} : vector<128x8xf32> to vector<128x4xf32>
      %cst_18 = arith.constant dense<0xFF800000> : vector<128xf32>
      %20 = vector.multi_reduction <maximumf>, %19, %cst_18 [1] : vector<128x4xf32> to vector<128xf32>
      %21 = vector.shape_cast %20 : vector<128xf32> to vector<128x1xf32>
      %22 = vector.broadcast %21 : vector<128x1xf32> to vector<128x4xf32>
      %23 = arith.subf %19, %22 : vector<128x4xf32>
      %24 = math.exp %23 : vector<128x4xf32>
      %cst_19 = arith.constant dense<0.000000e+00> : vector<128xf32>
      %25 = vector.multi_reduction <add>, %24, %cst_19 [1] : vector<128x4xf32> to vector<128xf32>
      %26 = vector.shape_cast %25 : vector<128xf32> to vector<128x1xf32>
      %27 = vector.broadcast %26 : vector<128x1xf32> to vector<128x4xf32>
      %28 = arith.divf %24, %27 : vector<128x4xf32>
      %29 = vector.extract_strided_slice %18 {offsets = [0, 4], sizes = [128, 1], strides = [1, 1]} : vector<128x8xf32> to vector<128x1xf32>
      %30 = arith.negf %29 : vector<128x1xf32>
      %31 = math.exp %30 : vector<128x1xf32>
      %cst_20 = arith.constant 1.000000e+00 : f32
      %32 = vector.broadcast %cst_20 : f32 to vector<128x1xf32>
      %33 = arith.addf %32, %31 : vector<128x1xf32>
      %34 = arith.divf %32, %33 : vector<128x1xf32>
      %cst_21 = arith.constant 2.500000e-01 : f32
      %35 = vector.broadcast %cst_21 : f32 to vector<128x1xf32>
      %36 = arith.mulf %34, %35 : vector<128x1xf32>
      %37 = vector.broadcast %36 : vector<128x1xf32> to vector<128x4xf32>
      %38 = arith.subf %28, %37 : vector<128x4xf32>
      %cst_22 = arith.constant 0.000000e+00 : f32
      %39 = vector.broadcast %cst_22 : f32 to vector<128x4xf32>
      %40 = arith.cmpf oge, %38, %39 : vector<128x4xf32>
      %41 = arith.extui %40 : vector<128x4xi1> to vector<128x4xi32>
      %42 = arith.sitofp %41 : vector<128x4xi32> to vector<128x4xf32>
      %43 = arith.mulf %38, %42 : vector<128x4xf32>
      %cst_23 = arith.constant dense<0.000000e+00> : vector<128xf32>
      %44 = vector.multi_reduction <add>, %43, %cst_23 [1] : vector<128x4xf32> to vector<128xf32>
      %45 = vector.shape_cast %44 : vector<128xf32> to vector<128x1xf32>
      %cst_24 = arith.constant 0.000000e+00 : f32
      %46 = vector.broadcast %cst_24 : f32 to vector<128x1xf32>
      %47 = arith.cmpf oeq, %45, %46 : vector<128x1xf32>
      %cst_25 = arith.constant 1.000000e+00 : f32
      %48 = vector.broadcast %cst_25 : f32 to vector<128x1xf32>
      %49 = arith.select %47, %48, %45 : vector<128x1xi1>, vector<128x1xf32>
      %50 = vector.broadcast %49 : vector<128x1xf32> to vector<128x4xf32>
      %51 = arith.divf %43, %50 : vector<128x4xf32>
      %cst_26 = arith.constant 2.000000e+00 : f32
      %52 = vector.broadcast %cst_26 : f32 to vector<128x4xf32>
      %53 = arith.mulf %51, %52 : vector<128x4xf32>
      %c0_27 = arith.constant 0 : index
      %c0_28 = arith.constant 0 : index
      %54 = vector.load %arg7[%c0_27, %c0_28] : memref<32x32xf32, #tpu.memory_space<vmem>>, vector<32x32xf32>
      %cst_29 = arith.constant dense<0.000000e+00> : vector<128x32xf32>
      %55 = tpu.matmul %0, %54, %cst_29 {dimension_numbers = #tpu.dot_dimension_numbers<[1], [0], [0], [1], [0, 0, 1, 1], [], []>} : vector<128x32xf32>, vector<32x32xf32>, vector<128x32xf32> -> vector<128x32xf32>
      %56 = vector.extract_strided_slice %55 {offsets = [0, 0], sizes = [128, 8], strides = [1, 1]} : vector<128x32xf32> to vector<128x8xf32>
      %57 = vector.extract_strided_slice %53 {offsets = [0, 0], sizes = [128, 1], strides = [1, 1]} : vector<128x4xf32> to vector<128x1xf32>
      %58 = vector.broadcast %57 : vector<128x1xf32> to vector<128x8xf32>
      %59 = arith.mulf %56, %58 : vector<128x8xf32>
      %60 = vector.extract_strided_slice %55 {offsets = [0, 8], sizes = [128, 8], strides = [1, 1]} : vector<128x32xf32> to vector<128x8xf32>
      %61 = vector.extract_strided_slice %53 {offsets = [0, 1], sizes = [128, 1], strides = [1, 1]} : vector<128x4xf32> to vector<128x1xf32>
      %62 = vector.broadcast %61 : vector<128x1xf32> to vector<128x8xf32>
      %63 = arith.mulf %60, %62 : vector<128x8xf32>
      %64 = vector.extract_strided_slice %55 {offsets = [0, 16], sizes = [128, 8], strides = [1, 1]} : vector<128x32xf32> to vector<128x8xf32>
      %65 = vector.extract_strided_slice %53 {offsets = [0, 2], sizes = [128, 1], strides = [1, 1]} : vector<128x4xf32> to vector<128x1xf32>
      %66 = vector.broadcast %65 : vector<128x1xf32> to vector<128x8xf32>
      %67 = arith.mulf %64, %66 : vector<128x8xf32>
      %68 = vector.extract_strided_slice %55 {offsets = [0, 24], sizes = [128, 8], strides = [1, 1]} : vector<128x32xf32> to vector<128x8xf32>
      %69 = vector.extract_strided_slice %53 {offsets = [0, 3], sizes = [128, 1], strides = [1, 1]} : vector<128x4xf32> to vector<128x1xf32>
      %70 = vector.broadcast %69 : vector<128x1xf32> to vector<128x8xf32>
      %71 = arith.mulf %68, %70 : vector<128x8xf32>
      %72 = tpu.concatenate %59, %63, %67, %71 in 1 : vector<128x8xf32>, vector<128x8xf32>, vector<128x8xf32>, vector<128x8xf32> -> vector<128x32xf32>
      %c0_30 = arith.constant 0 : index
      %c0_31 = arith.constant 0 : index
      %73 = vector.load %arg10[%c0_30, %c0_31] : memref<128x32xf32, #tpu.memory_space<vmem>>, vector<128x32xf32>
      tpu.vector_store %arg10[%c0_30, %c0_31], %72 {strides = array<i32>} : memref<128x32xf32, #tpu.memory_space<vmem>>, vector<128x32xf32>,
    } else {
    }
    %c0_2 = arith.constant 0 : index
    %c0_3 = arith.constant 0 : index
    %4 = vector.load %arg3[%c0_2, %c0_3] : memref<32x32xf32, #tpu.memory_space<vmem>>, vector<32x32xf32>
    %cst = arith.constant dense<0.000000e+00> : vector<128x32xf32>
    %5 = tpu.matmul %0, %4, %cst {dimension_numbers = #tpu.dot_dimension_numbers<[1], [0], [0], [1], [0, 0, 1, 1], [], []>} : vector<128x32xf32>, vector<32x32xf32>, vector<128x32xf32> -> vector<128x32xf32>
    %c0_4 = arith.constant 0 : index
    %c0_5 = arith.constant 0 : index
    %6 = vector.load %arg4[%c0_4, %c0_5] : memref<1x32xf32, #tpu.memory_space<vmem>>, vector<1x32xf32>
    %7 = vector.broadcast %6 : vector<1x32xf32> to vector<128x32xf32>
    %8 = arith.addf %5, %7 : vector<128x32xf32>
    %c0_6 = arith.constant 0 : index
    %c0_7 = arith.constant 0 : index
    %9 = vector.load %arg10[%c0_6, %c0_7] : memref<128x32xf32, #tpu.memory_space<vmem>>, vector<128x32xf32>
    %c0_8 = arith.constant 0 : index
    %c0_9 = arith.constant 0 : index
    %10 = vector.load %arg8[%c0_8, %c0_9] : memref<32x32xf32, #tpu.memory_space<vmem>>, vector<32x32xf32>
    %cst_10 = arith.constant dense<0.000000e+00> : vector<128x32xf32>
    %11 = tpu.matmul %9, %10, %cst_10 {dimension_numbers = #tpu.dot_dimension_numbers<[1], [0], [0], [1], [0, 0, 1, 1], [], []>} : vector<128x32xf32>, vector<32x32xf32>, vector<128x32xf32> -> vector<128x32xf32>
    %12 = arith.addf %8, %11 : vector<128x32xf32>
    %c0_11 = arith.constant 0 : index
    %c0_12 = arith.constant 0 : index
    %13 = vector.load %arg9[%c0_11, %c0_12] : memref<128x32xf32, #tpu.memory_space<vmem>>, vector<128x32xf32>
    tpu.vector_store %arg9[%c0_11, %c0_12], %12 {strides = array<i32>} : memref<128x32xf32, #tpu.memory_space<vmem>>, vector<128x32xf32>,
    return
  }
  func.func @transform_0(%arg0: i32, %arg1: i32) -> (i32, i32) {
    %c0_i32 = arith.constant 0 : i32
    %c0_i32_0 = arith.constant 0 : i32
    return %arg0, %c0_i32 : i32, i32
  }
  func.func @transform_1(%arg0: i32, %arg1: i32) -> (i32, i32) {
    %c0_i32 = arith.constant 0 : i32
    %c0_i32_0 = arith.constant 0 : i32
    return %c0_i32, %arg1 : i32, i32
  }
  func.func @transform_2(%arg0: i32, %arg1: i32) -> (i32, i32) {
    %c0_i32 = arith.constant 0 : i32
    %c0_i32_0 = arith.constant 0 : i32
    return %c0_i32, %arg1 : i32, i32
  }
  func.func @transform_3(%arg0: i32, %arg1: i32) -> (i32, i32) {
    %c0_i32 = arith.constant 0 : i32
    %c0_i32_0 = arith.constant 0 : i32
    %c0_i32_1 = arith.constant 0 : i32
    return %c0_i32, %c0_i32_0 : i32, i32
  }
  func.func @transform_4(%arg0: i32, %arg1: i32) -> (i32, i32) {
    %c0_i32 = arith.constant 0 : i32
    %c0_i32_0 = arith.constant 0 : i32
    %c0_i32_1 = arith.constant 0 : i32
    return %c0_i32, %c0_i32_0 : i32, i32
  }
  func.func @transform_5(%arg0: i32, %arg1: i32) -> (i32, i32) {
    %c0_i32 = arith.constant 0 : i32
    %c0_i32_0 = arith.constant 0 : i32
    %c0_i32_1 = arith.constant 0 : i32
    return %c0_i32, %c0_i32_0 : i32, i32
  }
  func.func @transform_6(%arg0: i32, %arg1: i32) -> (i32, i32) {
    %c0_i32 = arith.constant 0 : i32
    %c0_i32_0 = arith.constant 0 : i32
    return %c0_i32, %arg1 : i32, i32
  }
  func.func @transform_7(%arg0: i32, %arg1: i32) -> (i32, i32) {
    %c0_i32 = arith.constant 0 : i32
    return %arg0, %arg1 : i32, i32
  }
}

</mosaic_0001>

<bundles_post_ra>
// kernel: tpu_custom_call.1
= control target key start
LH: loop header
LB: loop body
LE: loop exit
PB: predicated region body
PF: predicated region fallthrough
CT: control target
= control target key end

     0   :  { %vm54_vm0 = vcmask 261120   ;;  %vm168_vm1 = vcmask 31744   ;;  %v2469_v19 = vmov 4   ;;  %s3669_s3 = inlined_call_operand.vmem [shape: f32[32,8], index: 3, kind: input, shape index: {}]   ;;  %s3670_s0 = inlined_call_operand.vmem [shape: f32[128,32], index: 0, kind: input, shape index: {}]   ;;  %s3671_s4 = inlined_call_operand.vmem [shape: f32[1,8], index: 4, kind: input, shape index: {}]   ;;  %s3672_s5 = inlined_call_operand.vmem [shape: f32[32,32], index: 5, kind: input, shape index: {}]   ;;  %s3673_s1 = inlined_call_operand.vmem [shape: f32[32,32], index: 1, kind: input, shape index: {}]   ;;  %s3674_s6 = inlined_call_operand.vmem [shape: f32[32,32], index: 6, kind: input, shape index: {}]   ;;  %s3675_s2 = inlined_call_operand.vmem [shape: f32[1,32], index: 2, kind: input, shape index: {}]   ;;  %s3676_s7 = inlined_call_operand.vmem [shape: f32[128,32], index: 7, kind: output, shape index: {}]  }
   0x1   :  { %v49_v0 = vld [vmem:[%s3669_s3 + $0x18] sm:$0xff]  ;;  %v48_v1 = vld [vmem:[%s3669_s3 + $0x10] sm:$0xff]  ;;  %v47_v2 = vld [vmem:[%s3669_s3 + $0x8] sm:$0xff]  ;;  %2234 = vset.pattern.permute.xlu2 %v2469_v19  ;;  %2235 = vset.pattern.permute.xlu0 %v2469_v19 }
   0x2   :  { %115 = vmatpush.msra.mxu0 %v49_v0  ;;  %v46_v3 = vld [vmem:[%s3669_s3] sm:$0xff]  ;;  %v27_v5 = vld [vmem:[%s3670_s0 + $0x8] sm:$0xff]  ;;  %v28_v6 = vld [vmem:[%s3670_s0 + $0x10] sm:$0xff]  ;;  %2236 = vset.pattern.permute.xlu1 %v2469_v19 }
   0x3   :  { %v26_v4 = vld [vmem:[%s3670_s0] sm:$0xff]  ;;  %v29_v7 = vld [vmem:[%s3670_s0 + $0x18] sm:$0xff]  ;;  %v31_v9 = vld [vmem:[%s3670_s0 + $0x28] sm:$0xff] }
   0x4   :  { %116 = vmatpush.msra.mxu0 %v48_v1  ;;  %v30_v8 = vld [vmem:[%s3670_s0 + $0x20] sm:$0xff]  ;;  %v32_v10 = vld [vmem:[%s3670_s0 + $0x30] sm:$0xff]  ;;  %v33_v11 = vld [vmem:[%s3670_s0 + $0x38] sm:$0xff] }
   0x5   :  { %v34_v12 = vld [vmem:[%s3670_s0 + $0x40] sm:$0xff]  ;;  %v35_v13 = vld [vmem:[%s3670_s0 + $0x48] sm:$0xff]  ;;  %v36_v14 = vld [vmem:[%s3670_s0 + $0x50] sm:$0xff] }
   0x6   :  { %117 = vmatpush.msra.mxu0 %v47_v2  ;;  %v37_v15 = vld [vmem:[%s3670_s0 + $0x58] sm:$0xff]  ;;  %v38_v16 = vld [vmem:[%s3670_s0 + $0x60] sm:$0xff]  ;;  %v39_v53 = vld [vmem:[%s3670_s0 + $0x68] sm:$0xff] }
   0x7   :  { %v2582_v17 = vld [vmem:[%s3671_s4] ss:$0 sm:$0xff] }
   0x8   :  { %118 = vmatpush.msra.mxu0 %v46_v3 }
   0x9   :  { %2132 = vmatmul.msk.f32.vlgmr.msra.gmra.mxu0 %vm54_vm0, %v26_v4 }
  0x11   :  { %2133 = vmatmul.msk.f32.gmra.mxu0 %vm54_vm0, %v27_v5 }
  0x19   :  { %2134 = vmatmul.msk.f32.gmra.mxu0 %vm54_vm0, %v28_v6 }
  0x21   :  { %2135 = vmatmul.msk.f32.gmra.mxu0 %vm54_vm0, %v29_v7 }
  0x29   :  { %2136 = vmatmul.msk.f32.gmra.mxu0 %vm54_vm0, %v30_v8  ;;  %v40_v8 = vld [vmem:[%s3670_s0 + $0x70] sm:$0xff] }
  0x31   :  { %2137 = vmatmul.msk.f32.gmra.mxu0 %vm54_vm0, %v31_v9 }
  0x39   :  { %2138 = vmatmul.msk.f32.gmra.mxu0 %vm54_vm0, %v32_v10 }
  0x41   :  { %2139 = vmatmul.msk.f32.gmra.mxu0 %vm54_vm0, %v33_v11 }
  0x49   :  { %2140 = vmatmul.msk.f32.gmra.mxu0 %vm54_vm0, %v34_v12 }
  0x51   :  { %2141 = vmatmul.msk.f32.gmra.mxu0 %vm54_vm0, %v35_v13 }
  0x59   :  { %2142 = vmatmul.msk.f32.gmra.mxu0 %vm54_vm0, %v36_v14  ;;  %v41_v14 = vld [vmem:[%s3670_s0 + $0x78] sm:$0xff] }
  0x61   :  { %2143 = vmatmul.msk.f32.gmra.mxu0 %vm54_vm0, %v37_v15 }
  0x69   :  { %2144 = vmatmul.msk.f32.gmra.mxu0 %vm54_vm0, %v38_v16 }
  0x71   :  { %2145 = vmatmul.msk.f32.gmra.mxu0 %vm54_vm0, %v39_v53 }
  0x79   :  { %2146 = vmatmul.msk.f32.gmra.mxu0 %vm54_vm0, %v40_v8 }
  0x81   :  { %2147 = vmatmul.msk.f32.gmra.mxu0 %vm54_vm0, %v41_v14 }
  0x86   :  { %v120_v18 = vpop.f32.mrf.mxu0 }
  0x87   :  { %v2585_v20 = vadd.f32 %v2582_v17, %v120_v18 }
  0x89   :  { %v2148_v21 = vmul.f32 -1.442695, %v2585_v20  ;;  %v169_v22 = vsel %vm168_vm1, %v2585_v20, -inf }
  0x8a   :  { %170 = vmax.xlane.f32.xlu0 %v169_v22 }
  0x8b   :  { %2293 = vpow2.f32 %v2148_v21 }
  0x8e   :  { %v123_v23 = vpop.f32.mrf.mxu0 }
  0x8f   :  { %v2591_v24 = vadd.f32 %v2582_v17, %v123_v23 }
  0x91   :  { %v2294_v25 = vpop.eup %2293  ;;  %v2149_v26 = vmul.f32 -1.442695, %v2591_v24  ;;  %v172_v27 = vsel %vm168_vm1, %v2591_v24, -inf }
  0x92   :  { %v601_v28 = vadd.f32 1.0, %v2294_v25  ;;  %173 = vmax.xlane.f32.xlu0 %v172_v27 }
  0x93   :  { %2295 = vpow2.f32 %v2149_v26 }
  0x94   :  { %2297 = vrcp.f32 %v601_v28  ;;  %v628_v39 = vand.u32 2147483648, %v601_v28  ;;  %v626_v42 = vand.u32 2147483647, %v601_v28  ;;  %vm622_vm3 = vweird.f32 %v601_v28 }
  0x96   :  { %v126_v29 = vpop.f32.mrf.mxu0  ;;  %v629_v48 = vor.u32 1.1754944e-38, %v628_v39  ;;  %vm627_vm5 = vcmp.eq.f32.partialorder %v626_v42, 8.507059e+37 }
  0x97   :  { %v2597_v30 = vadd.f32 %v2582_v17, %v126_v29 }
  0x99   :  { %v2296_v31 = vpop.eup %2295  ;;  %v2150_v32 = vmul.f32 -1.442695, %v2597_v30  ;;  %v175_v33 = vsel %vm168_vm1, %v2597_v30, -inf }
  0x9a   :  { %v2298_v34 = vpop.eup %2297  ;;  %v602_v35 = vadd.f32 1.0, %v2296_v31  ;;  %176 = vmax.xlane.f32.xlu1 %v175_v33 }
  0x9b   :  { %2299 = vpow2.f32 %v2150_v32  ;;  %v618_v36 = vmul.f32 %v2298_v34, %v601_v28  ;;  %vm623_vm2 = vweird.f32 %v2298_v34 }
  0x9c   :  { %2301 = vrcp.f32 %v602_v35  ;;  %vm624_vm4 = vmor %vm622_vm3, %vm623_vm2  ;;  %vm637_vm6 = vweird.f32 %v602_v35  ;;  %v643_v52 = vand.u32 2147483648, %v602_v35  ;;  %v641_v56 = vand.u32 2147483647, %v602_v35 }
  0x9d   :  { %v619_v37 = vsub.f32 1.0, %v618_v36 }
  0x9e   :  { %v129_v38 = vpop.f32.mrf.mxu0  ;;  %v644_v59 = vor.u32 1.1754944e-38, %v643_v52  ;;  %vm642_vm9 = vcmp.eq.f32.partialorder %v641_v56, 8.507059e+37 }
  0x9f   :  { %v2603_v40 = vadd.f32 %v2582_v17, %v129_v38  ;;  %v620_v41 = vmul.f32 %v2298_v34, %v619_v37 }
  0xa1   :  { %v2300_v43 = vpop.eup %2299  ;;  %v178_v44 = vsel %vm168_vm1, %v2603_v40, -inf  ;;  %v621_v45 = vadd.f32 %v2298_v34, %v620_v41  ;;  %v2151_v15 = vmul.f32 -1.442695, %v2603_v40 }
  0xa2   :  { %v2302_v46 = vpop.eup %2301  ;;  %v603_v47 = vadd.f32 1.0, %v2300_v43  ;;  %179 = vmax.xlane.f32.xlu1 %v178_v44 }
  0xa3   :  { %v625_v49 = vsel %vm624_vm4, %v2298_v34, %v621_v45  ;;  %v633_v50 = vmul.f32 %v2302_v46, %v602_v35  ;;  %vm638_vm7 = vweird.f32 %v2302_v46 }
  0xa4   :  { %2303 = vrcp.f32 %v603_v47  ;;  %v630_v51 = vsel %vm627_vm5, %v629_v48, %v625_v49  ;;  %vm639_vm8 = vmor %vm637_vm6, %vm638_vm7  ;;  %vm652_vm10 = vweird.f32 %v603_v47  ;;  %v658_v1 = vand.u32 2147483648, %v603_v47 }
  0xa5   :  { %v857_v54 = vmul.f32 0.25, %v630_v51  ;;  %v634_v55 = vsub.f32 1.0, %v633_v50  ;;  %v656_v4 = vand.u32 2147483647, %v603_v47  ;;  %2305 = vpow2.f32 %v2151_v15 }
  0xa6   :  { %v132_v57 = vpop.f32.mrf.mxu0  ;;  %v659_v7 = vor.u32 1.1754944e-38, %v658_v1 }
  0xa7   :  { %875 = vperm.xlu2 %2234, %v857_v54   ;;  %v635_v58 = vmul.f32 %v2302_v46, %v634_v55  ;;  %vm657_vm13 = vcmp.eq.f32.partialorder %v656_v4, 8.507059e+37  ;;  %v2621_v18 = vadd.f32 %v2582_v17, %v132_v57 }
  0xa9   :  { %v636_v60 = vadd.f32 %v2302_v46, %v635_v58  ;;  %v2152_v19 = vmul.f32 -1.442695, %v2621_v18  ;;  %v181_v29 = vsel %vm168_vm1, %v2621_v18, -inf }
  0xaa   :  { %v2304_v61 = vpop.eup %2303 }
  0xab   :  { %v640_v62 = vsel %vm639_vm8, %v2302_v46, %v636_v60  ;;  %v648_v63 = vmul.f32 %v2304_v61, %v603_v47  ;;  %vm653_vm11 = vweird.f32 %v2304_v61  ;;  %v2306_v23 = vpop.eup %2305  ;;  %2307 = vpow2.f32 %v2152_v19 }
  0xac   :  { %v645_v0 = vsel %vm642_vm9, %v644_v59, %v640_v62  ;;  %vm654_vm12 = vmor %vm652_vm10, %vm653_vm11  ;;  %v604_v27 = vadd.f32 1.0, %v2306_v23 }
  0xad   :  { %v858_v2 = vmul.f32 0.25, %v645_v0  ;;  %v649_v3 = vsub.f32 1.0, %v648_v63 }
  0xae   :  { %v135_v5 = vpop.f32.mrf.mxu0  ;;  %vm667_vm14 = vweird.f32 %v604_v27  ;;  %v673_v56 = vand.u32 2147483648, %v604_v27  ;;  %v671_v59 = vand.u32 2147483647, %v604_v27 }
  0xaf   :  { %880 = vperm.xlu0 %2235, %v858_v2   ;;  %v650_v6 = vmul.f32 %v2304_v61, %v649_v3  ;;  %v2628_v25 = vadd.f32 %v2582_v17, %v135_v5 }
  0xb0   :  { %v674_v0 = vor.u32 1.1754944e-38, %v673_v56  ;;  %vm672_vm5 = vcmp.eq.f32.partialorder %v671_v59, 8.507059e+37 }
  0xb1   :  { %v651_v9 = vadd.f32 %v2304_v61, %v650_v6  ;;  %v2153_v28 = vmul.f32 -1.442695, %v2628_v25  ;;  %v2308_v31 = vpop.eup %2307  ;;  %v184_v37 = vsel %vm168_vm1, %v2628_v25, -inf }
  0xb2   :  { %v2637_v35 = vadd.f32 1.0, %v2308_v31 }
  0xb3   :  { %v655_v10 = vsel %vm654_vm12, %v2304_v61, %v651_v9 }
  0xb4   :  { %v660_v11 = vsel %vm657_vm13, %v659_v7, %v655_v10  ;;  %vm682_vm7 = vweird.f32 %v2637_v35  ;;  %v688_v9 = vand.u32 2147483648, %v2637_v35 }
  0xb5   :  { %v859_v13 = vmul.f32 0.25, %v660_v11  ;;  %v686_v11 = vand.u32 2147483647, %v2637_v35 }
  0xb6   :  { %v138_v12 = vpop.f32.mrf.mxu0  ;;  %v689_v19 = vor.u32 1.1754944e-38, %v688_v9 }
  0xb7   :  { %v2635_v33 = vadd.f32 %v2582_v17, %v138_v12  ;;  %vm687_vm11 = vcmp.eq.f32.partialorder %v686_v11, 8.507059e+37 }
  0xb9   :  { %v187_v39 = vsel %vm168_vm1, %v2635_v33, -inf }
  0xbb   :  { %885 = vperm.xlu1 %2236, %v859_v13  }
  0xbe   :  { %v141_v16 = vpop.f32.mrf.mxu0 }
  0xbf   :  { %v2651_v49 = vadd.f32 %v2582_v17, %v141_v16 }
  0xc1   :  { %v190_v54 = vsel %vm168_vm1, %v2651_v49, -inf }
  0xc6   :  { %v144_v21 = vpop.f32.mrf.mxu0 }
  0xc7   :  { %v2625_v22 = vadd.f32 %v2582_v17, %v144_v21 }
  0xc9   :  { %v2156_v26 = vmul.f32 -1.442695, %v2625_v22 }
  0xcb   :  { %2309 = vpow2.f32 %v2156_v26 }
  0xcc   :  { %2311 = vrcp.f32 %v604_v27 }
  0xcd   :  { %2313 = vpow2.f32 %v2153_v28 }
  0xce   :  { %v147_v41 = vpop.f32.mrf.mxu0 }
  0xcf   :  { %v2647_v45 = vadd.f32 %v2582_v17, %v147_v41  ;;  %v2154_v41 = vmul.f32 -1.442695, %v2635_v33 }
  0xd0   :  { %182 = vmax.xlane.f32.xlu2 %v181_v29 }
  0xd1   :  { %v2310_v32 = vpop.eup %2309  ;;  %v196_v50 = vsel %vm168_vm1, %v2647_v45, -inf }
  0xd2   :  { %v609_v34 = vadd.f32 1.0, %v2310_v32  ;;  %v2312_v36 = vpop.eup %2311 }
  0xd3   :  { %v2314_v38 = vpop.eup %2313  ;;  %v663_v42 = vmul.f32 %v2312_v36, %v604_v27  ;;  %vm668_vm15 = vweird.f32 %v2312_v36 }
  0xd4   :  { %2315 = vrcp.f32 %v609_v34  ;;  %v2644_v43 = vadd.f32 1.0, %v2314_v38  ;;  %vm2658_vm2 = vmor %vm667_vm14, %vm668_vm15  ;;  %vm742_vm3 = vweird.f32 %v609_v34  ;;  %v748_v62 = vand.u32 2147483648, %v609_v34 }
  0xd5   :  { %2317 = vrcp.f32 %v2637_v35  ;;  %v664_v47 = vsub.f32 1.0, %v663_v42  ;;  %v746_v2 = vand.u32 2147483647, %v609_v34 }
  0xd6   :  { %2319 = vrcp.f32 %v2644_v43  ;;  %v749_v5 = vor.u32 1.1754944e-38, %v748_v62  ;;  %v150_v16 = vpop.f32.mrf.mxu0  ;;  %vm697_vm12 = vweird.f32 %v2644_v43  ;;  %v703_v26 = vand.u32 2147483648, %v2644_v43 }
  0xd7   :  { %v665_v52 = vmul.f32 %v2312_v36, %v664_v47  ;;  %vm747_vm9 = vcmp.eq.f32.partialorder %v746_v2, 8.507059e+37  ;;  %v701_v28 = vand.u32 2147483647, %v2644_v43  ;;  %v2691_v59 = vadd.f32 %v2582_v17, %v150_v16 }
  0xd8   :  { %185 = vmax.xlane.f32.xlu2 %v184_v37  ;;  %v704_v31 = vor.u32 1.1754944e-38, %v703_v26 }
  0xd9   :  { %188 = vmax.xlane.f32.xlu0 %v187_v39  ;;  %v666_v58 = vadd.f32 %v2312_v36, %v665_v52  ;;  %vm702_vm15 = vcmp.eq.f32.partialorder %v701_v28, 8.507059e+37 }
  0xda   :  { %v2316_v44 = vpop.eup %2315 }
  0xdb   :  { %v738_v46 = vmul.f32 %v2316_v44, %v609_v34  ;;  %v2318_v48 = vpop.eup %2317  ;;  %vm743_vm4 = vweird.f32 %v2316_v44  ;;  %v670_v3 = vsel %vm2658_vm2, %v2312_v36, %v666_v58  ;;  %v193_v58 = vsel %vm168_vm1, %v2625_v22, -inf }
  0xdc   :  { %v678_v53 = vmul.f32 %v2318_v48, %v2637_v35  ;;  %v2320_v55 = vpop.eup %2319  ;;  %vm744_vm6 = vmor %vm742_vm3, %vm743_vm4  ;;  %vm683_vm8 = vweird.f32 %v2318_v48  ;;  %v675_v7 = vsel %vm672_vm5, %v674_v0, %v670_v3 }
  0xdd   :  { %v739_v51 = vsub.f32 1.0, %v738_v46  ;;  %v693_v63 = vmul.f32 %v2320_v55, %v2644_v43  ;;  %vm2668_vm10 = vmor %vm682_vm7, %vm683_vm8  ;;  %v860_v13 = vmul.f32 0.25, %v675_v7  ;;  %vm698_vm13 = vweird.f32 %v2320_v55 }
  0xde   :  { %v679_v60 = vsub.f32 1.0, %v678_v53  ;;  %vm699_vm14 = vmor %vm697_vm12, %vm698_vm13  ;;  %v153_v35 = vpop.f32.mrf.mxu0 }
  0xdf   :  { %v740_v57 = vmul.f32 %v2316_v44, %v739_v51  ;;  %v694_v6 = vsub.f32 1.0, %v693_v63  ;;  %v2678_v37 = vadd.f32 %v2582_v17, %v153_v35  ;;  %v199_v63 = vsel %vm168_vm1, %v2691_v59, -inf }
  0xe0   :  { %v680_v4 = vmul.f32 %v2318_v48, %v679_v60 }
  0xe1   :  { %197 = vmax.xlane.f32.xlu0 %v196_v50  ;;  %v741_v1 = vadd.f32 %v2316_v44, %v740_v57  ;;  %v695_v15 = vmul.f32 %v2320_v55, %v694_v6  ;;  %v2159_v39 = vmul.f32 -1.442695, %v2678_v37 }
  0xe2   :  { %v681_v10 = vadd.f32 %v2318_v48, %v680_v4 }
  0xe3   :  { %v745_v8 = vsel %vm744_vm6, %v2316_v44, %v741_v1  ;;  %v696_v27 = vadd.f32 %v2320_v55, %v695_v15  ;;  %2321 = vpow2.f32 %v2159_v39  ;;  %v2155_v44 = vmul.f32 -1.442695, %v2651_v49 }
  0xe4   :  { %v750_v14 = vsel %vm747_vm9, %v749_v5, %v745_v8  ;;  %v685_v21 = vsel %vm2668_vm10, %v2318_v48, %v681_v10  ;;  %2323 = vpow2.f32 %v2154_v41  ;;  %v2157_v41 = vmul.f32 -1.442695, %v2647_v45 }
  0xe5   :  { %191 = vmax.xlane.f32.xlu1 %v190_v54  ;;  %v865_v23 = vmul.f32 0.25, %v750_v14  ;;  %v690_v29 = vsel %vm687_vm11, %v689_v19, %v685_v21  ;;  %v700_v34 = vsel %vm699_vm14, %v2320_v55, %v696_v27 }
  0xe6   :  { %v861_v32 = vmul.f32 0.25, %v690_v29  ;;  %v705_v36 = vsel %vm702_vm15, %v704_v31, %v700_v34  ;;  %v156_v48 = vpop.f32.mrf.mxu0 }
  0xe7   :  { %v862_v38 = vmul.f32 0.25, %v705_v36  ;;  %v2684_v51 = vadd.f32 %v2582_v17, %v156_v48 }
  0xe9   :  { %v2322_v42 = vpop.eup %2321  ;;  %v205_v55 = vsel %vm168_vm1, %v2684_v51, -inf }
  0xea   :  { %v612_v43 = vadd.f32 1.0, %v2322_v42  ;;  %v2324_v46 = vpop.eup %2323 }
  0xeb   :  { %v607_v47 = vadd.f32 1.0, %v2324_v46 }
  0xec   :  { %2325 = vrcp.f32 %v612_v43  ;;  %vm787_vm2 = vweird.f32 %v612_v43  ;;  %v793_v62 = vand.u32 2147483648, %v612_v43  ;;  %v791_v1 = vand.u32 2147483647, %v612_v43 }
  0xed   :  { %2327 = vpow2.f32 %v2155_v44  ;;  %vm712_vm6 = vweird.f32 %v607_v47  ;;  %v718_v9 = vand.u32 2147483648, %v607_v47  ;;  %v716_v12 = vand.u32 2147483647, %v607_v47 }
  0xee   :  { %2329 = vrcp.f32 %v607_v47  ;;  %v794_v4 = vor.u32 1.1754944e-38, %v793_v62  ;;  %vm792_vm5 = vcmp.eq.f32.partialorder %v791_v1, 8.507059e+37  ;;  %v159_v10 = vpop.f32.mrf.mxu0  ;;  %v2158_v44 = vmul.f32 -1.442695, %v2691_v59 }
  0xef   :  { %v719_v15 = vor.u32 1.1754944e-38, %v718_v9  ;;  %vm717_vm9 = vcmp.eq.f32.partialorder %v716_v12, 8.507059e+37  ;;  %v2709_v1 = vadd.f32 %v2582_v17, %v159_v10 }
  0xf0   :  { %890 = vperm.xlu2 %2234, %v860_v13  }
  0xf2   :  { %v2326_v50 = vpop.eup %2325 }
  0xf3   :  { %v2328_v52 = vpop.eup %2327  ;;  %v783_v53 = vmul.f32 %v2326_v50, %v612_v43  ;;  %vm788_vm3 = vweird.f32 %v2326_v50 }
  0xf4   :  { %v608_v54 = vadd.f32 1.0, %v2328_v52  ;;  %v2330_v57 = vpop.eup %2329  ;;  %vm789_vm4 = vmor %vm787_vm2, %vm788_vm3 }
  0xf5   :  { %915 = vperm.xlu0 %2235, %v865_v23   ;;  %v784_v56 = vsub.f32 1.0, %v783_v53  ;;  %v708_v61 = vmul.f32 %v2330_v57, %v607_v47  ;;  %vm713_vm7 = vweird.f32 %v2330_v57 }
  0xf6   :  { %2331 = vrcp.f32 %v608_v54  ;;  %vm714_vm8 = vmor %vm712_vm6, %vm713_vm7  ;;  %vm727_vm10 = vweird.f32 %v608_v54  ;;  %v733_v23 = vand.u32 2147483648, %v608_v54  ;;  %v731_v27 = vand.u32 2147483647, %v608_v54  ;;  %v162_v28 = vpop.f32.mrf.mxu0 }
  0xf7   :  { %v785_v60 = vmul.f32 %v2326_v50, %v784_v56  ;;  %v709_v2 = vsub.f32 1.0, %v708_v61  ;;  %v2696_v34 = vadd.f32 %v2582_v17, %v162_v28 }
  0xf8   :  { %895 = vperm.xlu2 %2234, %v861_v32   ;;  %v734_v31 = vor.u32 1.1754944e-38, %v733_v23  ;;  %vm732_vm13 = vcmp.eq.f32.partialorder %v731_v27, 8.507059e+37 }
  0xf9   :  { %v786_v0 = vadd.f32 %v2326_v50, %v785_v60  ;;  %v710_v6 = vmul.f32 %v2330_v57, %v709_v2  ;;  %v2162_v36 = vmul.f32 -1.442695, %v2696_v34 }
  0xfb   :  { %v790_v5 = vsel %vm789_vm4, %v2326_v50, %v786_v0  ;;  %v711_v11 = vadd.f32 %v2330_v57, %v710_v6  ;;  %2333 = vpow2.f32 %v2162_v36  ;;  %v208_v6 = vsel %vm168_vm1, %v2709_v1, -inf }
  0xfc   :  { %v2332_v3 = vpop.eup %2331  ;;  %v795_v8 = vsel %vm792_vm5, %v794_v4, %v790_v5  ;;  %2335 = vpow2.f32 %v2157_v41 }
  0xfd   :  { %v723_v7 = vmul.f32 %v2332_v3, %v608_v54  ;;  %v868_v14 = vmul.f32 0.25, %v795_v8  ;;  %v715_v16 = vsel %vm714_vm8, %v2330_v57, %v711_v11  ;;  %vm728_vm11 = vweird.f32 %v2332_v3 }
  0xfe   :  { %900 = vperm.xlu1 %2236, %v862_v38   ;;  %v720_v21 = vsel %vm717_vm9, %v719_v15, %v715_v16  ;;  %vm729_vm12 = vmor %vm727_vm10, %vm728_vm11  ;;  %v165_v46 = vpop.f32.mrf.mxu0 }
  0xff   :  { %v724_v13 = vsub.f32 1.0, %v723_v7  ;;  %v863_v29 = vmul.f32 0.25, %v720_v21  ;;  %v2702_v50 = vadd.f32 %v2582_v17, %v165_v46 }
 0x101   :  { %v725_v19 = vmul.f32 %v2332_v3, %v724_v13  ;;  %v2334_v39 = vpop.eup %2333  ;;  %v214_v53 = vsel %vm168_vm1, %v2702_v50, -inf  ;;  %v2711_v5 = vpop.permute.xlu2 %875 }
 0x102   :  { %v615_v42 = vadd.f32 1.0, %v2334_v39  ;;  %v2336_v43 = vpop.eup %2335 }
 0x103   :  { %v726_v26 = vadd.f32 %v2332_v3, %v725_v19  ;;  %v610_v48 = vadd.f32 1.0, %v2336_v43  ;;  %v2160_v43 = vmul.f32 -1.442695, %v2684_v51 }
 0x104   :  { %2337 = vrcp.f32 %v615_v42  ;;  %vm832_vm14 = vweird.f32 %v615_v42  ;;  %v838_v61 = vand.u32 2147483648, %v615_v42  ;;  %v836_v0 = vand.u32 2147483647, %v615_v42 }
 0x105   :  { %v730_v32 = vsel %vm729_vm12, %v2332_v3, %v726_v26  ;;  %2339 = vpow2.f32 %v2158_v44  ;;  %vm757_vm4 = vweird.f32 %v610_v48  ;;  %v763_v17 = vand.u32 2147483648, %v610_v48 }
 0x106   :  { %v735_v35 = vsel %vm732_vm13, %v734_v31, %v730_v32  ;;  %2341 = vrcp.f32 %v610_v48  ;;  %v839_v2 = vor.u32 1.1754944e-38, %v838_v61  ;;  %vm837_vm3 = vcmp.eq.f32.partialorder %v836_v0, 8.507059e+37 }
 0x107   :  { %v864_v38 = vmul.f32 0.25, %v735_v35  ;;  %v761_v13 = vand.u32 2147483647, %v610_v48  ;;  %v764_v16 = vor.u32 1.1754944e-38, %v763_v17 }
 0x109   :  { %vm762_vm7 = vcmp.eq.f32.partialorder %v761_v13, 8.507059e+37 }
 0x10a   :  { %v2338_v47 = vpop.eup %2337 }
 0x10b   :  { %v828_v52 = vmul.f32 %v2338_v47, %v615_v42  ;;  %vm833_vm15 = vweird.f32 %v2338_v47 }
 0x10c   :  { %vm834_vm2 = vmor %vm832_vm14, %vm833_vm15 }
 0x10d   :  { %v829_v54 = vsub.f32 1.0, %v828_v52  ;;  %v177_v41 = vpop.xlane.xlu1 %176  ;;  %v2161_v52 = vmul.f32 -1.442695, %v2709_v1 }
 0x10e   :  { %v219_v42 = vsub.f32 %v2597_v30, %v177_v41 }
 0x10f   :  { %v830_v60 = vmul.f32 %v2338_v47, %v829_v54 }
 0x110   :  { %v237_v44 = vmul.f32 1.442695, %v219_v42 }
 0x11f   :  { %206 = vmax.xlane.f32.xlu0 %v205_v55  ;;  %v2340_v55 = vpop.eup %2339 }
 0x120   :  { %v2342_v56 = vpop.eup %2341  ;;  %v611_v57 = vadd.f32 1.0, %v2340_v55 }
 0x121   :  { %194 = vmax.xlane.f32.xlu2 %v193_v58  ;;  %v202_v58 = vsel %vm168_vm1, %v2678_v37, -inf  ;;  %v753_v62 = vmul.f32 %v2342_v56, %v610_v48  ;;  %vm758_vm5 = vweird.f32 %v2342_v56 }
 0x122   :  { %2343 = vrcp.f32 %v611_v57  ;;  %vm759_vm6 = vmor %vm757_vm4, %vm758_vm5  ;;  %vm772_vm8 = vweird.f32 %v611_v57  ;;  %v778_v26 = vand.u32 2147483648, %v611_v57 }
 0x123   :  { %v754_v3 = vsub.f32 1.0, %v753_v62  ;;  %2345 = vpow2.f32 %v2160_v43  ;;  %v2163_v43 = vmul.f32 -1.442695, %v2702_v50 }
 0x124   :  { %v779_v32 = vor.u32 1.1754944e-38, %v778_v26  ;;  %2347 = vpow2.f32 %v237_v44 }
 0x125   :  { %v755_v9 = vmul.f32 %v2342_v56, %v754_v3  ;;  %2349 = vpow2.f32 %v2161_v52 }
 0x127   :  { %v756_v10 = vadd.f32 %v2342_v56, %v755_v9 }
 0x128   :  { %200 = vmax.xlane.f32.xlu1 %v199_v63  ;;  %v831_v63 = vadd.f32 %v2338_v47, %v830_v60  ;;  %v2344_v7 = vpop.eup %2343 }
 0x129   :  { %v768_v11 = vmul.f32 %v2344_v7, %v611_v57  ;;  %v760_v19 = vsel %vm759_vm6, %v2342_v56, %v756_v10  ;;  %vm773_vm9 = vweird.f32 %v2344_v7  ;;  %v2346_v48 = vpop.eup %2345 }
 0x12a   :  { %v835_v4 = vsel %vm834_vm2, %v2338_v47, %v831_v63  ;;  %v765_v23 = vsel %vm762_vm7, %v764_v16, %v760_v19  ;;  %vm774_vm10 = vmor %vm772_vm8, %vm773_vm9  ;;  %v613_v54 = vadd.f32 1.0, %v2346_v48  ;;  %v2725_v56 = vpop.eup %2347 }
 0x12b   :  { %v840_v8 = vsel %vm837_vm3, %v839_v2, %v835_v4  ;;  %v769_v15 = vsub.f32 1.0, %v768_v11  ;;  %v866_v27 = vmul.f32 0.25, %v765_v23  ;;  %v2350_v61 = vpop.eup %2349  ;;  %v211_v2 = vsel %vm168_vm1, %v2696_v34, -inf }
 0x12c   :  { %v871_v12 = vmul.f32 0.25, %v840_v8  ;;  %v614_v3 = vadd.f32 1.0, %v2350_v61  ;;  %vm802_vm12 = vweird.f32 %v613_v54  ;;  %v808_v17 = vand.u32 2147483648, %v613_v54 }
 0x12d   :  { %v770_v21 = vmul.f32 %v2344_v7, %v769_v15  ;;  %v806_v13 = vand.u32 2147483647, %v613_v54 }
 0x12e   :  { %v809_v16 = vor.u32 1.1754944e-38, %v808_v17  ;;  %vm817_vm2 = vweird.f32 %v614_v3 }
 0x12f   :  { %v771_v28 = vadd.f32 %v2344_v7, %v770_v21  ;;  %vm807_vm15 = vcmp.eq.f32.partialorder %v806_v13, 8.507059e+37 }
 0x131   :  { %v775_v35 = vsel %vm774_vm10, %v2344_v7, %v771_v28  ;;  %v823_v28 = vand.u32 2147483648, %v614_v3 }
 0x133   :  { %930 = vperm.xlu0 %2235, %v868_v14  }
 0x139   :  { %905 = vperm.xlu2 %2234, %v863_v29   ;;  %v776_v29 = vand.u32 2147483647, %v611_v57  ;;  %v171_v57 = vpop.xlane.xlu0 %170 }
 0x13b   :  { %vm777_vm11 = vcmp.eq.f32.partialorder %v776_v29, 8.507059e+37 }
 0x13c   :  { %v780_v36 = vsel %vm777_vm11, %v779_v32, %v775_v35  ;;  %v824_v32 = vor.u32 1.1754944e-38, %v823_v28 }
 0x141   :  { %910 = vperm.xlu1 %2236, %v864_v38   ;;  %v867_v38 = vmul.f32 0.25, %v780_v36  ;;  %v174_v36 = vpop.xlane.xlu0 %173 }
 0x142   :  { %v218_v48 = vsub.f32 %v2591_v24, %v174_v36 }
 0x143   :  { %v2715_v14 = vpop.xlane.xlu2 %182 }
 0x149   :  { %v2745_v42 = vpop.permute.xlu0 %880 }
 0x14b   :  { %v186_v31 = vpop.xlane.xlu2 %185 }
 0x14c   :  { %v222_v47 = vsub.f32 %v2628_v25, %v186_v31  ;;  %v217_v25 = vsub.f32 %v2585_v20, %v171_v57  ;;  %v821_v31 = vand.u32 2147483647, %v614_v3 }
 0x14e   :  { %v233_v0 = vmul.f32 1.442695, %v217_v25  ;;  %vm822_vm5 = vcmp.eq.f32.partialorder %v821_v31, 8.507059e+37  ;;  %v180_v25 = vpop.xlane.xlu1 %179 }
 0x14f   :  { %v220_v61 = vsub.f32 %v2603_v40, %v180_v25  ;;  %v221_v25 = vsub.f32 %v2621_v18, %v2715_v14 }
 0x153   :  { %v2717_v39 = vpop.permute.xlu2 %890 }
 0x156   :  { %v2764_v40 = vpop.permute.xlu1 %885 }
 0x15b   :  { %v2721_v46 = vpop.permute.xlu2 %895 }
 0x15d   :  { %215 = vmax.xlane.f32.xlu0 %v214_v53  ;;  %v243_v53 = vmul.f32 1.442695, %v222_v47  ;;  %v189_v47 = vpop.xlane.xlu0 %188 }
 0x15f   :  { %2351 = vpow2.f32 %v243_v53  ;;  %v235_v53 = vmul.f32 1.442695, %v218_v48 }
 0x160   :  { %2353 = vrcp.f32 %v613_v54 }
 0x162   :  { %203 = vmax.xlane.f32.xlu2 %v202_v58  ;;  %v271_v58 = vsel %vm168_vm1, %v2725_v56, 0.0 }
 0x165   :  { %v2731_v62 = vpop.eup %2351 }
 0x166   :  { %v2354_v63 = vpop.eup %2353 }
 0x167   :  { %v798_v4 = vmul.f32 %v2354_v63, %v613_v54  ;;  %vm803_vm13 = vweird.f32 %v2354_v63 }
 0x168   :  { %vm804_vm14 = vmor %vm802_vm12, %vm803_vm13 }
 0x16b   :  { %209 = vmax.xlane.f32.xlu1 %v208_v6  ;;  %v799_v6 = vsub.f32 1.0, %v798_v4  ;;  %v223_v4 = vsub.f32 %v2635_v33, %v189_v47  ;;  %v192_v33 = vpop.xlane.xlu1 %191 }
 0x16d   :  { %v800_v9 = vmul.f32 %v2354_v63, %v799_v6 }
 0x16f   :  { %v801_v10 = vadd.f32 %v2354_v63, %v800_v9 }
 0x171   :  { %945 = vperm.xlu0 %2235, %v871_v12   ;;  %v805_v19 = vsel %vm804_vm14, %v2354_v63, %v801_v10 }
 0x172   :  { %v810_v23 = vsel %vm807_vm15, %v809_v16, %v805_v19 }
 0x173   :  { %v2778_v31 = vpop.permute.xlu1 %900 }
 0x17a   :  { %920 = vperm.xlu2 %2234, %v866_v27   ;;  %v869_v27 = vmul.f32 0.25, %v810_v23 }
 0x184   :  { %925 = vperm.xlu1 %2236, %v867_v38  }
 0x194   :  { %v195_v55 = vpop.xlane.xlu2 %194 }
 0x195   :  { %v225_v30 = vsub.f32 %v2625_v22, %v195_v55  ;;  %v280_v22 = vsel %vm168_vm1, %v2731_v62, 0.0 }
 0x197   :  { %v249_v60 = vmul.f32 1.442695, %v225_v30 }
 0x199   :  { %2355 = vpow2.f32 %v249_v60 }
 0x19a   :  { %2357 = vpow2.f32 %v233_v0 }
 0x19b   :  { %272 = vadd.xlane.f32.xlu0 %v271_v58  ;;  %2359 = vrcp.f32 %v614_v3  ;;  %v198_v58 = vpop.xlane.xlu0 %197 }
 0x19c   :  { %v2748_v44 = vpop.permute.xlu2 %905  ;;  %2361 = vpow2.f32 %v2163_v43  ;;  %v226_v17 = vsub.f32 %v2647_v45, %v198_v58 }
 0x19d   :  { %2363 = vpow2.f32 %v235_v53 }
 0x19e   :  { %v251_v19 = vmul.f32 1.442695, %v226_v17 }
 0x19f   :  { %v2737_v20 = vpop.eup %2355 }
 0x1a0   :  { %v2739_v7 = vpop.eup %2357  ;;  %v289_v8 = vsel %vm168_vm1, %v2737_v20, 0.0 }
 0x1a1   :  { %v2360_v11 = vpop.eup %2359  ;;  %v265_v12 = vsel %vm168_vm1, %v2739_v7, 0.0 }
 0x1a2   :  { %v813_v15 = vmul.f32 %v2360_v11, %v614_v3  ;;  %vm818_vm3 = vweird.f32 %v2360_v11  ;;  %v2362_v52 = vpop.eup %2361 }
 0x1a3   :  { %212 = vmax.xlane.f32.xlu2 %v211_v2  ;;  %281 = vadd.xlane.f32.xlu0 %v280_v22  ;;  %vm819_vm4 = vmor %vm817_vm2, %vm818_vm3  ;;  %v616_v57 = vadd.f32 1.0, %v2362_v52  ;;  %v2752_v60 = vpop.eup %2363  ;;  %v2759_v2 = vpop.permute.xlu0 %915 }
 0x1a4   :  { %v814_v21 = vsub.f32 1.0, %v813_v15  ;;  %v268_v3 = vsel %vm168_vm1, %v2752_v60, 0.0 }
 0x1a5   :  { %vm847_vm6 = vweird.f32 %v616_v57  ;;  %v853_v10 = vand.u32 2147483648, %v616_v57  ;;  %v851_v16 = vand.u32 2147483647, %v616_v57 }
 0x1a6   :  { %v815_v26 = vmul.f32 %v2360_v11, %v814_v21 }
 0x1a7   :  { %v854_v21 = vor.u32 1.1754944e-38, %v853_v10  ;;  %vm852_vm9 = vcmp.eq.f32.partialorder %v851_v16, 8.507059e+37 }
 0x1a8   :  { %v816_v29 = vadd.f32 %v2360_v11, %v815_v26 }
 0x1aa   :  { %v820_v35 = vsel %vm819_vm4, %v2360_v11, %v816_v29 }
 0x1ab   :  { %290 = vadd.xlane.f32.xlu0 %v289_v8  ;;  %v825_v38 = vsel %vm822_vm5, %v824_v32, %v820_v35  ;;  %v245_v8 = vmul.f32 1.442695, %v223_v4  ;;  %v207_v9 = vpop.xlane.xlu0 %206  ;;  %v224_v4 = vsub.f32 %v2651_v49, %v192_v33 }
 0x1ac   :  { %v870_v41 = vmul.f32 0.25, %v825_v38  ;;  %v229_v45 = vsub.f32 %v2684_v51, %v207_v9  ;;  %v201_v51 = vpop.xlane.xlu1 %200 }
 0x1ae   :  { %266 = vadd.xlane.f32.xlu1 %v265_v12  ;;  %v257_v35 = vmul.f32 1.442695, %v229_v45 }
 0x1b3   :  { %v2771_v23 = vpop.permute.xlu0 %930 }
 0x1bb   :  { %935 = vperm.xlu2 %2234, %v869_v27  }
 0x1c7   :  { %940 = vperm.xlu1 %2236, %v870_v41  }
 0x1d0   :  { %v216_v36 = vpop.xlane.xlu0 %215 }
 0x1d1   :  { %v232_v41 = vsub.f32 %v2702_v50, %v216_v36 }
 0x1d3   :  { %v263_v47 = vmul.f32 1.442695, %v232_v41 }
 0x1d5   :  { %v204_v54 = vpop.xlane.xlu2 %203 }
 0x1d6   :  { %v228_v55 = vsub.f32 %v2678_v37, %v204_v54  ;;  %v239_v37 = vmul.f32 1.442695, %v220_v61  ;;  %v2791_v54 = vpop.permute.xlu1 %910  ;;  %v241_v61 = vmul.f32 1.442695, %v221_v25 }
 0x1d8   :  { %v255_v30 = vmul.f32 1.442695, %v228_v55 }
 0x1da   :  { %2365 = vpow2.f32 %v255_v30 }
 0x1db   :  { %2367 = vrcp.f32 %v616_v57 }
 0x1dc   :  { %2369 = vpow2.f32 %v239_v37 }
 0x1dd   :  { %2371 = vpow2.f32 %v245_v8  ;;  %v2795_v50 = vpop.permute.xlu2 %920  ;;  %v247_v8 = vmul.f32 1.442695, %v224_v4 }
 0x1de   :  { %2373 = vpow2.f32 %v251_v19  ;;  %v210_v58 = vpop.xlane.xlu1 %209 }
 0x1df   :  { %2375 = vpow2.f32 %v257_v35 }
 0x1e0   :  { %v2755_v63 = vpop.eup %2365  ;;  %2377 = vpow2.f32 %v263_v47 }
 0x1e1   :  { %v2368_v0 = vpop.eup %2367  ;;  %v298_v24 = vsel %vm168_vm1, %v2755_v63, 0.0 }
 0x1e2   :  { %299 = vadd.xlane.f32.xlu0 %v298_v24  ;;  %v843_v22 = vmul.f32 %v2368_v0, %v616_v57  ;;  %v2766_v12 = vpop.eup %2369  ;;  %vm848_vm7 = vweird.f32 %v2368_v0 }
 0x1e3   :  { %v274_v13 = vsel %vm168_vm1, %v2766_v12, 0.0  ;;  %vm849_vm8 = vmor %vm847_vm6, %vm848_vm7  ;;  %v2773_v27 = vpop.eup %2371  ;;  %v2787_v52 = vpop.permute.xlu0 %945 }
 0x1e4   :  { %269 = vadd.xlane.f32.xlu2 %v268_v3  ;;  %v844_v6 = vsub.f32 1.0, %v843_v22  ;;  %v283_v29 = vsel %vm168_vm1, %v2773_v27, 0.0  ;;  %v2780_v38 = vpop.eup %2373 }
 0x1e5   :  { %v292_v43 = vsel %vm168_vm1, %v2780_v38, 0.0  ;;  %v2785_v48 = vpop.eup %2375 }
 0x1e6   :  { %v845_v11 = vmul.f32 %v2368_v0, %v844_v6  ;;  %v301_v53 = vsel %vm168_vm1, %v2785_v48, 0.0  ;;  %v2793_v55 = vpop.eup %2377 }
 0x1e7   :  { %v310_v30 = vsel %vm168_vm1, %v2793_v55, 0.0 }
 0x1e8   :  { %v846_v15 = vadd.f32 %v2368_v0, %v845_v11 }
 0x1ea   :  { %v850_v26 = vsel %vm849_vm8, %v2368_v0, %v846_v15 }
 0x1eb   :  { %v855_v28 = vsel %vm852_vm9, %v854_v21, %v850_v26 }
 0x1ec   :  { %v872_v32 = vmul.f32 0.25, %v855_v28 }
 0x1f1   :  { %275 = vadd.xlane.f32.xlu1 %v274_v13 }
 0x1f6   :  { %v2802_v3 = vpop.permute.xlu1 %925 }
 0x1f9   :  { %284 = vadd.xlane.f32.xlu1 %v283_v29 }
 0x1fc   :  { %950 = vperm.xlu2 %2234, %v872_v32  }
 0x201   :  { %293 = vadd.xlane.f32.xlu1 %v292_v43 }
 0x209   :  { %302 = vadd.xlane.f32.xlu1 %v301_v53 }
 0x20e   :  { %v273_v57 = vpop.xlane.xlu0 %272 }
 0x20f   :  { %2379 = vrcp.f32 %v273_v57  ;;  %v354_v19 = vand.u32 2147483648, %v273_v57  ;;  %vm348_vm11 = vweird.f32 %v273_v57  ;;  %v352_v26 = vand.u32 2147483647, %v273_v57 }
 0x210   :  { %2381 = vpow2.f32 %v241_v61 }
 0x211   :  { %311 = vadd.xlane.f32.xlu1 %v310_v30  ;;  %v355_v35 = vor.u32 1.1754944e-38, %v354_v19  ;;  %vm353_vm14 = vcmp.eq.f32.partialorder %v352_v26, 8.507059e+37 }
 0x215   :  { %v2380_v37 = vpop.eup %2379 }
 0x216   :  { %v213_v0 = vpop.xlane.xlu2 %212  ;;  %v344_v6 = vmul.f32 %v2380_v37, %v273_v57  ;;  %v2805_v9 = vpop.eup %2381  ;;  %vm349_vm10 = vweird.f32 %v2380_v37 }
 0x217   :  { %v231_v24 = vsub.f32 %v2696_v34, %v213_v0  ;;  %v227_v34 = vsub.f32 %v2691_v59, %v201_v51  ;;  %v277_v49 = vsel %vm168_vm1, %v2805_v9, 0.0  ;;  %v230_v59 = vsub.f32 %v2709_v1, %v210_v58  ;;  %vm350_vm12 = vmor %vm348_vm11, %vm349_vm10 }
 0x218   :  { %v345_v11 = vsub.f32 1.0, %v344_v6 }
 0x219   :  { %v261_v22 = vmul.f32 1.442695, %v231_v24  ;;  %v253_v13 = vmul.f32 1.442695, %v227_v34  ;;  %v259_v43 = vmul.f32 1.442695, %v230_v59 }
 0x21a   :  { %v346_v10 = vmul.f32 %v2380_v37, %v345_v11 }
 0x21b   :  { %2383 = vpow2.f32 %v261_v22 }
 0x21c   :  { %v347_v16 = vadd.f32 %v2380_v37, %v346_v10 }
 0x21e   :  { %v351_v32 = vsel %vm350_vm12, %v2380_v37, %v347_v16  ;;  %v2470_v37 = vmov 0.0  }
 0x21f   :  { %v356_v47 = vsel %vm353_vm14, %v355_v35, %v351_v32 }
 0x220   :  { %v357_v58 = vmul.f32 %v2725_v56, %v356_v47 }
 0x221   :  { %v2807_v17 = vpop.eup %2383  ;;  %v267_v18 = vpop.xlane.xlu1 %266 }
 0x222   :  { %2385 = vrcp.f32 %v267_v18  ;;  %v307_v14 = vsel %vm168_vm1, %v2807_v17, 0.0  ;;  %v324_v28 = vand.u32 2147483648, %v267_v18  ;;  %v322_v41 = vand.u32 2147483647, %v267_v18 }
 0x223   :  { %2387 = vpow2.f32 %v247_v8  ;;  %308 = vadd.xlane.f32.xlu0 %v307_v14  ;;  %vm318_vm15 = vweird.f32 %v267_v18  ;;  %v955_v24 = vsub.f32 %v357_v58, %v2764_v40  ;;  %v282_v8 = vpop.xlane.xlu0 %281  ;;  %v2841_v14 = vpop.permute.xlu2 %935 }
 0x224   :  { %2389 = vpow2.f32 %v253_v13  ;;  %v325_v53 = vor.u32 1.1754944e-38, %v324_v28  ;;  %vm323_vm3 = vcmp.eq.f32.partialorder %v322_v41, 8.507059e+37  ;;  %vm393_vm7 = vweird.f32 %v282_v8 }
 0x225   :  { %278 = vadd.xlane.f32.xlu2 %v277_v49  ;;  %2391 = vpow2.f32 %v259_v43  ;;  %vm971_vm5 = vcmp.ge.f32.partialorder %v955_v24, 0.0  ;;  %v397_v35 = vand.u32 2147483647, %v282_v8 }
 0x226   :  { %2393 = vrcp.f32 %v282_v8 }
 0x227   :  { %vm398_vm9 = vcmp.eq.f32.partialorder %v397_v35, 8.507059e+37 }
 0x228   :  { %v2386_v15 = vpop.eup %2385 }
 0x229   :  { %v2814_v33 = vpop.eup %2387  ;;  %v314_v21 = vmul.f32 %v2386_v15, %v267_v18  ;;  %vm319_vm13 = vweird.f32 %v2386_v15 }
 0x22a   :  { %v286_v29 = vsel %vm168_vm1, %v2814_v33, 0.0  ;;  %vm320_vm2 = vmor %vm318_vm15, %vm319_vm13  ;;  %v2819_v1 = vpop.eup %2389 }
 0x22b   :  { %v315_v45 = vsub.f32 1.0, %v314_v21  ;;  %v295_v61 = vsel %vm168_vm1, %v2819_v1, 0.0  ;;  %v2828_v4 = vpop.eup %2391  ;;  %v291_v18 = vpop.xlane.xlu0 %290 }
 0x22c   :  { %v2394_v34 = vpop.eup %2393  ;;  %2395 = vrcp.f32 %v291_v18  ;;  %vm438_vm14 = vweird.f32 %v291_v18 }
 0x22d   :  { %v316_v36 = vmul.f32 %v2386_v15, %v315_v45  ;;  %287 = vadd.xlane.f32.xlu2 %v286_v29  ;;  %v389_v10 = vmul.f32 %v2394_v34, %v282_v8  ;;  %vm394_vm6 = vweird.f32 %v2394_v34  ;;  %v399_v29 = vand.u32 2147483648, %v282_v8 }
 0x22e   :  { %vm395_vm8 = vmor %vm393_vm7, %vm394_vm6  ;;  %v442_v8 = vand.u32 2147483647, %v291_v18 }
 0x22f   :  { %v317_v51 = vadd.f32 %v2386_v15, %v316_v36  ;;  %v390_v49 = vsub.f32 1.0, %v389_v10 }
 0x231   :  { %v321_v57 = vsel %vm320_vm2, %v2386_v15, %v317_v51  ;;  %v391_v19 = vmul.f32 %v2394_v34, %v390_v49  ;;  %v400_v51 = vor.u32 1.1754944e-38, %v399_v29 }
 0x232   :  { %v326_v30 = vsel %vm323_vm3, %v325_v53, %v321_v57  ;;  %v2396_v13 = vpop.eup %2395  ;;  %vm443_vm3 = vcmp.eq.f32.partialorder %v442_v8, 8.507059e+37 }
 0x233   :  { %v327_v25 = vmul.f32 %v2739_v7, %v326_v30  ;;  %v304_v7 = vsel %vm168_vm1, %v2828_v4, 0.0  ;;  %v434_v21 = vmul.f32 %v2396_v13, %v291_v18  ;;  %v392_v26 = vadd.f32 %v2394_v34, %v391_v19 }
 0x234   :  { %vm439_vm11 = vweird.f32 %v2396_v13 }
 0x235   :  { %296 = vadd.xlane.f32.xlu2 %v295_v61  ;;  %v953_v0 = vsub.f32 %v327_v25, %v2711_v5  ;;  %v2166_v5 = vsel %vm971_vm5, 1.0, %v2470_v37  ;;  %v435_v59 = vsub.f32 1.0, %v434_v21  ;;  %v396_v43 = vsel %vm395_vm8, %v2394_v34, %v392_v26  ;;  %vm440_vm2 = vmor %vm438_vm14, %vm439_vm11 }
 0x236   :  { %v2837_v40 = vmul.f32 %v2166_v5, %v955_v24  ;;  %v401_v25 = vsel %vm398_vm9, %v400_v51, %v396_v43 }
 0x237   :  { %vm969_vm4 = vcmp.ge.f32.partialorder %v953_v0, 0.0  ;;  %v436_v41 = vmul.f32 %v2396_v13, %v435_v59  ;;  %v402_v5 = vmul.f32 %v2731_v62, %v401_v25 }
 0x238   :  { %v2164_v22 = vsel %vm969_vm4, 1.0, %v2470_v37  ;;  %v1039_v11 = vsel %vm168_vm1, %v2837_v40, 0.0 }
 0x239   :  { %v2830_v6 = vmul.f32 %v2164_v22, %v953_v0  ;;  %v2846_v45 = vpop.permute.xlu1 %940  ;;  %v437_v61 = vadd.f32 %v2396_v13, %v436_v41 }
 0x23b   :  { %v1033_v56 = vsel %vm168_vm1, %v2830_v6, 0.0  ;;  %v441_v19 = vsel %vm440_vm2, %v2396_v13, %v437_v61 }
 0x23c   :  { %1034 = vadd.xlane.f32.xlu1 %v1033_v56  ;;  %v444_v56 = vand.u32 2147483648, %v291_v18 }
 0x23d   :  { %305 = vadd.xlane.f32.xlu2 %v304_v7 }
 0x23e   :  { %v445_v21 = vor.u32 1.1754944e-38, %v444_v56 }
 0x240   :  { %v446_v18 = vsel %vm443_vm3, %v445_v21, %v441_v19 }
 0x241   :  { %v447_v35 = vmul.f32 %v2737_v20, %v446_v18 }
 0x243   :  { %v961_v25 = vsub.f32 %v447_v35, %v2759_v2 }
 0x245   :  { %1040 = vadd.xlane.f32.xlu2 %v1039_v11 }
 0x255   :  { %v2843_v15 = vpop.xlane.xlu0 %299 }
 0x256   :  { %2397 = vrcp.f32 %v2843_v15  ;;  %vm483_vm7 = vweird.f32 %v2843_v15 }
 0x257   :  { %v270_v16 = vpop.xlane.xlu2 %269 }
 0x258   :  { %2399 = vrcp.f32 %v270_v16  ;;  %v339_v57 = vand.u32 2147483648, %v270_v16  ;;  %v337_v58 = vand.u32 2147483647, %v270_v16  ;;  %vm333_vm12 = vweird.f32 %v270_v16 }
 0x25a   :  { %v340_v7 = vor.u32 1.1754944e-38, %v339_v57  ;;  %vm338_vm15 = vcmp.eq.f32.partialorder %v337_v58, 8.507059e+37 }
 0x25c   :  { %v2848_v28 = vpop.eup %2397 }
 0x25d   :  { %v479_v47 = vmul.f32 %v2848_v28, %v2843_v15  ;;  %vm484_vm4 = vweird.f32 %v2848_v28 }
 0x25e   :  { %v2400_v32 = vpop.eup %2399  ;;  %vm2867_vm8 = vmor %vm483_vm7, %vm484_vm4 }
 0x25f   :  { %v329_v36 = vmul.f32 %v2400_v32, %v270_v16  ;;  %vm334_vm10 = vweird.f32 %v2400_v32  ;;  %v480_v24 = vsub.f32 1.0, %v479_v47  ;;  %v958_v16 = vsub.f32 %v402_v5, %v2778_v31 }
 0x260   :  { %vm335_vm13 = vmor %vm333_vm12, %vm334_vm10  ;;  %v487_v31 = vand.u32 2147483647, %v2843_v15 }
 0x261   :  { %v330_v53 = vsub.f32 1.0, %v329_v36  ;;  %v481_v10 = vmul.f32 %v2848_v28, %v480_v24  ;;  %vm974_vm6 = vcmp.ge.f32.partialorder %v958_v16, 0.0 }
 0x262   :  { %vm488_vm11 = vcmp.eq.f32.partialorder %v487_v31, 8.507059e+37  ;;  %v2169_v58 = vsel %vm974_vm6, 1.0, %v2470_v37 }
 0x263   :  { %v331_v30 = vmul.f32 %v2400_v32, %v330_v53 }
 0x264   :  { %v276_v0 = vpop.xlane.xlu1 %275 }
 0x265   :  { %v332_v22 = vadd.f32 %v2400_v32, %v331_v30  ;;  %2401 = vrcp.f32 %v276_v0  ;;  %v369_v43 = vand.u32 2147483648, %v276_v0  ;;  %v367_v47 = vand.u32 2147483647, %v276_v0 }
 0x266   :  { %vm363_vm10 = vweird.f32 %v276_v0 }
 0x267   :  { %v336_v11 = vsel %vm335_vm13, %v2400_v32, %v332_v22  ;;  %v482_v32 = vadd.f32 %v2848_v28, %v481_v10  ;;  %v370_v61 = vor.u32 1.1754944e-38, %v369_v43  ;;  %vm368_vm13 = vcmp.eq.f32.partialorder %v367_v47, 8.507059e+37 }
 0x268   :  { %v341_v34 = vsel %vm338_vm15, %v340_v7, %v336_v11  ;;  %v2882_v7 = vmul.f32 %v2169_v58, %v958_v16  ;;  %vm977_vm15 = vcmp.ge.f32.partialorder %v961_v25, 0.0 }
 0x269   :  { %v342_v49 = vmul.f32 %v2752_v60, %v341_v34  ;;  %v489_v60 = vand.u32 2147483648, %v2843_v15  ;;  %v486_v53 = vsel %vm2867_vm8, %v2848_v28, %v482_v32 }
 0x26a   :  { %v1048_v21 = vsel %vm168_vm1, %v2882_v7, 0.0 }
 0x26b   :  { %v2402_v26 = vpop.eup %2401  ;;  %v954_v59 = vsub.f32 %v342_v49, %v2745_v42  ;;  %v490_v57 = vor.u32 1.1754944e-38, %v489_v60 }
 0x26c   :  { %v359_v29 = vmul.f32 %v2402_v26, %v276_v0  ;;  %v2857_v62 = vpop.xlane.xlu1 %284  ;;  %vm364_vm9 = vweird.f32 %v2402_v26 }
 0x26d   :  { %2403 = vrcp.f32 %v2857_v62  ;;  %vm970_vm5 = vcmp.ge.f32.partialorder %v954_v59, 0.0  ;;  %vm365_vm12 = vmor %vm363_vm10, %vm364_vm9  ;;  %v491_v56 = vsel %vm488_vm11, %v490_v57, %v486_v53  ;;  %v414_v2 = vand.u32 2147483648, %v2857_v62 }
 0x26e   :  { %v360_v13 = vsub.f32 1.0, %v359_v29  ;;  %v2165_v42 = vsel %vm970_vm5, 1.0, %v2470_v37  ;;  %v492_v11 = vmul.f32 %v2755_v63, %v491_v56  ;;  %v412_v10 = vand.u32 2147483647, %v2857_v62 }
 0x26f   :  { %v2871_v51 = vmul.f32 %v2165_v42, %v954_v59  ;;  %vm408_vm2 = vweird.f32 %v2857_v62  ;;  %v2172_v63 = vsel %vm977_vm15, 1.0, %v2470_v37  ;;  %v415_v59 = vor.u32 1.1754944e-38, %v414_v2 }
 0x270   :  { %v361_v41 = vmul.f32 %v2402_v26, %v360_v13  ;;  %vm413_vm5 = vcmp.eq.f32.partialorder %v412_v10, 8.507059e+37  ;;  %v2903_v13 = vmul.f32 %v2172_v63, %v961_v25 }
 0x271   :  { %v1036_v20 = vsel %vm168_vm1, %v2871_v51, 0.0 }
 0x272   :  { %v362_v15 = vadd.f32 %v2402_v26, %v361_v41  ;;  %1037 = vadd.xlane.f32.xlu0 %v1036_v20  ;;  %v1057_v53 = vsel %vm168_vm1, %v2903_v13, 0.0 }
 0x273   :  { %v2404_v30 = vpop.eup %2403 }
 0x274   :  { %v404_v24 = vmul.f32 %v2404_v30, %v2857_v62  ;;  %v294_v22 = vpop.xlane.xlu1 %293  ;;  %v366_v28 = vsel %vm365_vm12, %v2402_v26, %v362_v15  ;;  %vm409_vm14 = vweird.f32 %v2404_v30  ;;  %v964_v26 = vsub.f32 %v492_v11, %v2771_v23 }
 0x275   :  { %2405 = vrcp.f32 %v294_v22  ;;  %v371_v5 = vsel %vm368_vm13, %v370_v61, %v366_v28  ;;  %vm2892_vm3 = vmor %vm408_vm2, %vm409_vm14  ;;  %v459_v35 = vand.u32 2147483648, %v294_v22  ;;  %v457_v41 = vand.u32 2147483647, %v294_v22 }
 0x276   :  { %v405_v0 = vsub.f32 1.0, %v404_v24  ;;  %v372_v8 = vmul.f32 %v2766_v12, %v371_v5  ;;  %vm980_vm6 = vcmp.ge.f32.partialorder %v964_v26, 0.0  ;;  %vm453_vm8 = vweird.f32 %v294_v22 }
 0x277   :  { %v460_v15 = vor.u32 1.1754944e-38, %v459_v35  ;;  %vm458_vm11 = vcmp.eq.f32.partialorder %v457_v41, 8.507059e+37 }
 0x278   :  { %v406_v34 = vmul.f32 %v2404_v30, %v405_v0  ;;  %v956_v49 = vsub.f32 %v372_v8, %v2717_v39 }
 0x27a   :  { %v407_v19 = vadd.f32 %v2404_v30, %v406_v34  ;;  %1049 = vadd.xlane.f32.xlu0 %v1048_v21  ;;  %vm972_vm4 = vcmp.ge.f32.partialorder %v956_v49, 0.0 }
 0x27b   :  { %v2406_v16 = vpop.eup %2405  ;;  %v2167_v18 = vsel %vm972_vm4, 1.0, %v2470_v37 }
 0x27c   :  { %v449_v29 = vmul.f32 %v2406_v16, %v294_v22  ;;  %v303_v39 = vpop.xlane.xlu1 %302  ;;  %v411_v62 = vsel %vm2892_vm3, %v2404_v30, %v407_v19  ;;  %v2901_v60 = vmul.f32 %v2167_v18, %v956_v49  ;;  %vm454_vm7 = vweird.f32 %v2406_v16 }
 0x27d   :  { %2407 = vrcp.f32 %v303_v39  ;;  %v416_v31 = vsel %vm413_vm5, %v415_v59, %v411_v62  ;;  %vm455_vm9 = vmor %vm453_vm8, %vm454_vm7  ;;  %v504_v28 = vand.u32 2147483648, %v303_v39  ;;  %v502_v5 = vand.u32 2147483647, %v303_v39 }
 0x27e   :  { %v450_v32 = vsub.f32 1.0, %v449_v29  ;;  %v417_v42 = vmul.f32 %v2773_v27, %v416_v31  ;;  %v1042_v36 = vsel %vm168_vm1, %v2901_v60, 0.0  ;;  %v2175_v27 = vsel %vm980_vm6, 1.0, %v2470_v37  ;;  %v951_v29 = vpop.permute.xlu2 %950 }
 0x27f   :  { %1043 = vadd.xlane.f32.xlu1 %v1042_v36  ;;  %v2915_v24 = vmul.f32 %v2175_v27, %v964_v26  ;;  %vm498_vm13 = vweird.f32 %v303_v39  ;;  %v505_v49 = vor.u32 1.1754944e-38, %v504_v28  ;;  %vm503_vm2 = vcmp.eq.f32.partialorder %v502_v5, 8.507059e+37 }
 0x280   :  { %v451_v23 = vmul.f32 %v2406_v16, %v450_v32  ;;  %v959_v43 = vsub.f32 %v417_v42, %v2748_v44 }
 0x281   :  { %v1066_v2 = vsel %vm168_vm1, %v2915_v24, 0.0 }
 0x282   :  { %v452_v47 = vadd.f32 %v2406_v16, %v451_v23  ;;  %1058 = vadd.xlane.f32.xlu0 %v1057_v53  ;;  %vm975_vm10 = vcmp.ge.f32.partialorder %v959_v43, 0.0 }
 0x283   :  { %v2408_v57 = vpop.eup %2407  ;;  %v2170_v58 = vsel %vm975_vm10, 1.0, %v2470_v37 }
 0x284   :  { %v494_v20 = vmul.f32 %v2408_v57, %v303_v39  ;;  %v312_v30 = vpop.xlane.xlu1 %311  ;;  %v456_v25 = vsel %vm455_vm9, %v2406_v16, %v452_v47  ;;  %v2913_v61 = vmul.f32 %v2170_v58, %v959_v43  ;;  %vm499_vm12 = vweird.f32 %v2408_v57  ;;  %v1372_v47 = vld [vmem:[%s3672_s5 + $0x18] sm:$0xff] }
 0x285   :  { %2409 = vrcp.f32 %v312_v30  ;;  %v461_v22 = vsel %vm458_vm11, %v460_v15, %v456_v25  ;;  %vm500_vm14 = vmor %vm498_vm13, %vm499_vm12  ;;  %v549_v26 = vand.u32 2147483648, %v312_v30  ;;  %v547_v18 = vand.u32 2147483647, %v312_v30  ;;  %1385 = vmatpush.msra.mxu1 %v1372_v47  ;;  %v1369_v25 = vld [vmem:[%s3672_s5] sm:$0xff] }
 0x286   :  { %v495_v44 = vsub.f32 1.0, %v494_v20  ;;  %v462_v56 = vmul.f32 %v2780_v38, %v461_v22  ;;  %v1051_v8 = vsel %vm168_vm1, %v2913_v61, 0.0  ;;  %vm543_vm4 = vweird.f32 %v312_v30 }
 0x287   :  { %1052 = vadd.xlane.f32.xlu1 %v1051_v8  ;;  %v550_v31 = vor.u32 1.1754944e-38, %v549_v26  ;;  %vm548_vm7 = vcmp.eq.f32.partialorder %v547_v18, 8.507059e+37  ;;  %v2967_v18 = vld [vmem:[%s3670_s0 + $0x8] sm:$0xff] }
 0x288   :  { %v496_v0 = vmul.f32 %v2408_v57, %v495_v44  ;;  %v962_v11 = vsub.f32 %v462_v56, %v2795_v50 }
 0x28a   :  { %v497_v34 = vadd.f32 %v2408_v57, %v496_v0  ;;  %1067 = vadd.xlane.f32.xlu0 %v1066_v2  ;;  %vm978_vm15 = vcmp.ge.f32.partialorder %v962_v11, 0.0  ;;  %v2959_v0 = vld [vmem:[%s3670_s0] sm:$0xff] }
 0x28b   :  { %v2410_v10 = vpop.eup %2409  ;;  %v2173_v19 = vsel %vm978_vm15, 1.0, %v2470_v37 }
 0x28c   :  { %v539_v38 = vmul.f32 %v2410_v10, %v312_v30  ;;  %v501_v21 = vsel %vm500_vm14, %v2408_v57, %v497_v34  ;;  %v2924_v16 = vmul.f32 %v2173_v19, %v962_v11  ;;  %vm544_vm3 = vweird.f32 %v2410_v10  ;;  %v1371_v57 = vld [vmem:[%s3672_s5 + $0x10] sm:$0xff] }
 0x28d   :  { %v506_v12 = vsel %vm503_vm2, %v505_v49, %v501_v21  ;;  %vm545_vm6 = vmor %vm543_vm4, %vm544_vm3  ;;  %1386 = vmatpush.msra.mxu1 %v1371_v57 }
 0x28e   :  { %v540_v63 = vsub.f32 1.0, %v539_v38  ;;  %v507_v50 = vmul.f32 %v2785_v48, %v506_v12  ;;  %v1060_v59 = vsel %vm168_vm1, %v2924_v16, 0.0 }
 0x28f   :  { %1061 = vadd.xlane.f32.xlu1 %v1060_v59 }
 0x290   :  { %v541_v39 = vmul.f32 %v2410_v10, %v540_v63  ;;  %v965_v62 = vsub.f32 %v507_v50, %v2841_v14 }
 0x292   :  { %v542_v32 = vadd.f32 %v2410_v10, %v541_v39  ;;  %vm981_vm5 = vcmp.ge.f32.partialorder %v965_v62, 0.0 }
 0x293   :  { %v2176_v42 = vsel %vm981_vm5, 1.0, %v2470_v37 }
 0x294   :  { %v2931_v48 = vmul.f32 %v2176_v42, %v965_v62  ;;  %v546_v23 = vsel %vm545_vm6, %v2410_v10, %v542_v32 }
 0x295   :  { %v551_v35 = vsel %vm548_vm7, %v550_v31, %v546_v23  ;;  %v2471_v23 = vmov 2  }
 0x296   :  { %v1069_v36 = vsel %vm168_vm1, %v2931_v48, 0.0  ;;  %v552_v41 = vmul.f32 %v2793_v55, %v551_v35  ;;  %v309_v43 = vpop.xlane.xlu0 %308  ;;  %v1370_v55 = vld [vmem:[%s3672_s5 + $0x8] sm:$0xff]  ;;  %2239 = vset.pattern.permute.xlu0 %v2471_v23 }
 0x297   :  { %2411 = vrcp.f32 %v309_v43  ;;  %1070 = vadd.xlane.f32.xlu1 %v1069_v36  ;;  %1387 = vmatpush.msra.mxu1 %v1370_v55  ;;  %v534_v5 = vand.u32 2147483648, %v309_v43  ;;  %v532_v34 = vand.u32 2147483647, %v309_v43  ;;  %vm528_vm11 = vweird.f32 %v309_v43 }
 0x298   :  { %v279_v14 = vpop.xlane.xlu2 %278  ;;  %v968_v53 = vsub.f32 %v552_v41, %v951_v29  ;;  %v2472_v41 = vmov 3  }
 0x299   :  { %2413 = vrcp.f32 %v279_v14  ;;  %1388 = vmatpush.msra.mxu1 %v1369_v25  ;;  %v384_v10 = vand.u32 2147483648, %v279_v14  ;;  %v382_v38 = vand.u32 2147483647, %v279_v14  ;;  %v535_v19 = vor.u32 1.1754944e-38, %v534_v5  ;;  %2240 = vset.pattern.permute.xlu1 %v2472_v41 }
 0x29a   :  { %vm984_vm8 = vcmp.ge.f32.partialorder %v968_v53, 0.0  ;;  %2180 = vmatmul.msk.f32.vlgmr.msra.gmra.mxu1 %vm54_vm0, %v2959_v0  ;;  %vm378_vm13 = vweird.f32 %v279_v14  ;;  %vm533_vm14 = vcmp.eq.f32.partialorder %v532_v34, 8.507059e+37 }
 0x29b   :  { %v2179_v27 = vsel %vm984_vm8, 1.0, %v2470_v37  ;;  %v385_v50 = vor.u32 1.1754944e-38, %v384_v10  ;;  %vm383_vm2 = vcmp.eq.f32.partialorder %v382_v38, 8.507059e+37 }
 0x29c   :  { %v2946_v20 = vmul.f32 %v2179_v27, %v968_v53 }
 0x29d   :  { %v2412_v15 = vpop.eup %2411 }
 0x29e   :  { %v524_v58 = vmul.f32 %v2412_v15, %v309_v43  ;;  %v1078_v22 = vsel %vm168_vm1, %v2946_v20, 0.0  ;;  %vm529_vm9 = vweird.f32 %v2412_v15 }
 0x29f   :  { %v2414_v30 = vpop.eup %2413  ;;  %1079 = vadd.xlane.f32.xlu1 %v1078_v22  ;;  %vm530_vm12 = vmor %vm528_vm11, %vm529_vm9 }
 0x2a0   :  { %v374_v44 = vmul.f32 %v2414_v30, %v279_v14  ;;  %v2953_v28 = vpop.xlane.xlu2 %287  ;;  %v525_v56 = vsub.f32 1.0, %v524_v58  ;;  %vm379_vm10 = vweird.f32 %v2414_v30 }
 0x2a1   :  { %2415 = vrcp.f32 %v2953_v28  ;;  %vm380_vm15 = vmor %vm378_vm13, %vm379_vm10  ;;  %v427_v14 = vand.u32 2147483647, %v2953_v28  ;;  %vm423_vm7 = vweird.f32 %v2953_v28 }
 0x2a2   :  { %v375_v8 = vsub.f32 1.0, %v374_v44  ;;  %v526_v11 = vmul.f32 %v2412_v15, %v525_v56  ;;  %2181 = vmatmul.msk.f32.gmra.mxu1 %vm54_vm0, %v2967_v18 }
 0x2a3   :  { %vm428_vm8 = vcmp.eq.f32.partialorder %v427_v14, 8.507059e+37 }
 0x2a4   :  { %v376_v2 = vmul.f32 %v2414_v30, %v375_v8  ;;  %v527_v49 = vadd.f32 %v2412_v15, %v526_v11 }
 0x2a6   :  { %v377_v21 = vadd.f32 %v2414_v30, %v376_v2  ;;  %v531_v63 = vsel %vm530_vm12, %v2412_v15, %v527_v49 }
 0x2a7   :  { %v2416_v12 = vpop.eup %2415  ;;  %v536_v29 = vsel %vm533_vm14, %v535_v19, %v531_v63  ;;  %v2473_v19 = vmov 0  }
 0x2a8   :  { %v419_v26 = vmul.f32 %v2416_v12, %v2953_v28  ;;  %v297_v59 = vpop.xlane.xlu2 %296  ;;  %v381_v39 = vsel %vm380_vm15, %v2414_v30, %v377_v21  ;;  %v537_v32 = vmul.f32 %v2807_v17, %v536_v29  ;;  %vm424_vm4 = vweird.f32 %v2416_v12  ;;  %2237 = vset.pattern.permute.xlu2 %v2473_v19 }
 0x2a9   :  { %2417 = vrcp.f32 %v297_v59  ;;  %v386_v31 = vsel %vm383_vm2, %v385_v50, %v381_v39  ;;  %v429_v17 = vand.u32 2147483648, %v2953_v28  ;;  %vm425_vm9 = vmor %vm423_vm7, %vm424_vm4  ;;  %v472_v25 = vand.u32 2147483647, %v297_v59 }
 0x2aa   :  { %v420_v62 = vsub.f32 1.0, %v419_v26  ;;  %v387_v42 = vmul.f32 %v2805_v9, %v386_v31  ;;  %v967_v36 = vsub.f32 %v537_v32, %v2787_v52  ;;  %v474_v44 = vand.u32 2147483648, %v297_v59 }
 0x2ab   :  { %v430_v58 = vor.u32 1.1754944e-38, %v429_v17  ;;  %vm468_vm11 = vweird.f32 %v297_v59  ;;  %vm473_vm13 = vcmp.eq.f32.partialorder %v472_v25, 8.507059e+37 }
 0x2ac   :  { %v421_v35 = vmul.f32 %v2416_v12, %v420_v62  ;;  %v957_v43 = vsub.f32 %v387_v42, %v2721_v46  ;;  %vm983_vm3 = vcmp.ge.f32.partialorder %v967_v36, 0.0  ;;  %v2990_v46 = vld [vmem:[%s3670_s0 + $0x10] sm:$0xff]  ;;  %v475_v49 = vor.u32 1.1754944e-38, %v474_v44 }
 0x2ad   :  { %v2178_v9 = vsel %vm983_vm3, 1.0, %v2470_v37  ;;  %2182 = vmatmul.msk.f32.gmra.mxu1 %vm54_vm0, %v2990_v46 }
 0x2ae   :  { %v422_v57 = vadd.f32 %v2416_v12, %v421_v35  ;;  %v2982_v52 = vmul.f32 %v2178_v9, %v967_v36  ;;  %vm973_vm6 = vcmp.ge.f32.partialorder %v957_v43, 0.0 }
 0x2af   :  { %v2418_v47 = vpop.eup %2417  ;;  %v1035_v53 = vpop.xlane.xlu1 %1034  ;;  %v2168_v5 = vsel %vm973_vm6, 1.0, %v2470_v37 }
 0x2b0   :  { %v464_v27 = vmul.f32 %v2418_v47, %v297_v59  ;;  %vm1081_vm5 = vcmp.eq.f32.partialorder %v1035_v53, 0.0  ;;  %v2980_v55 = vpop.xlane.xlu2 %305  ;;  %v1075_v22 = vsel %vm168_vm1, %v2982_v52, 0.0  ;;  %vm469_vm10 = vweird.f32 %v2418_v47  ;;  %v3012_v59 = vld [vmem:[%s3670_s0 + $0x18] sm:$0xff] }
 0x2b1   :  { %v2984_v15 = vsel %vm1081_vm5, 1.0, %v1035_v53  ;;  %2419 = vrcp.f32 %v2980_v55  ;;  %1076 = vadd.xlane.f32.xlu0 %v1075_v22  ;;  %v426_v8 = vsel %vm425_vm9, %v2416_v12, %v422_v57  ;;  %v3000_v11 = vmul.f32 %v2168_v5, %v957_v43  ;;  %vm470_vm12 = vmor %vm468_vm11, %vm469_vm10 }
 0x2b2   :  { %v465_v30 = vsub.f32 1.0, %v464_v27  ;;  %2421 = vrcp.f32 %v2984_v15  ;;  %v431_v28 = vsel %vm428_vm8, %v430_v58, %v426_v8  ;;  %v1124_v32 = vand.u32 2147483648, %v2984_v15 }
 0x2b3   :  { %v432_v2 = vmul.f32 %v2814_v33, %v431_v28  ;;  %v1045_v38 = vsel %vm168_vm1, %v3000_v11, 0.0  ;;  %v519_v31 = vand.u32 2147483648, %v2980_v55  ;;  %v1122_v14 = vand.u32 2147483647, %v2984_v15 }
 0x2b4   :  { %v466_v56 = vmul.f32 %v2418_v47, %v465_v30  ;;  %1046 = vadd.xlane.f32.xlu2 %v1045_v38  ;;  %vm1118_vm3 = vweird.f32 %v2984_v15  ;;  %vm513_vm4 = vweird.f32 %v2980_v55  ;;  %v1125_v57 = vor.u32 1.1754944e-38, %v1124_v32  ;;  %v3090_v32 = vld [vmem:[%s3670_s0 + $0x50] sm:$0xff] }
 0x2b5   :  { %v960_v63 = vsub.f32 %v432_v2, %v2791_v54  ;;  %2183 = vmatmul.msk.f32.gmra.mxu1 %vm54_vm0, %v3012_v59  ;;  %v517_v54 = vand.u32 2147483647, %v2980_v55  ;;  %v520_v53 = vor.u32 1.1754944e-38, %v519_v31  ;;  %vm1123_vm9 = vcmp.eq.f32.partialorder %v1122_v14, 8.507059e+37 }
 0x2b6   :  { %v467_v34 = vadd.f32 %v2418_v47, %v466_v56 }
 0x2b7   :  { %v2420_v10 = vpop.eup %2419  ;;  %vm976_vm14 = vcmp.ge.f32.partialorder %v960_v63, 0.0  ;;  %vm518_vm8 = vcmp.eq.f32.partialorder %v517_v54, 8.507059e+37 }
 0x2b8   :  { %v2422_v21 = vpop.eup %2421  ;;  %v509_v12 = vmul.f32 %v2420_v10, %v2980_v55  ;;  %v471_v50 = vsel %vm470_vm12, %v2418_v47, %v467_v34  ;;  %vm514_vm15 = vweird.f32 %v2420_v10  ;;  %v2171_v35 = vsel %vm976_vm14, 1.0, %v2470_v37  ;;  %v3035_v55 = vld [vmem:[%s3670_s0 + $0x20] sm:$0xff]  ;;  %v1041_v2 = vpop.xlane.xlu2 %1040 }
 0x2b9   :  { %v1114_v26 = vmul.f32 %v2422_v21, %v2984_v15  ;;  %v476_v33 = vsel %vm473_vm13, %v475_v49, %v471_v50  ;;  %vm1119_vm2 = vweird.f32 %v2422_v21  ;;  %v3023_v47 = vmul.f32 %v2171_v35, %v960_v63  ;;  %vm515_vm6 = vmor %vm513_vm4, %vm514_vm15  ;;  %v3075_v49 = vld [vmem:[%s3670_s0 + $0x40] sm:$0xff]  ;;  %v3082_v63 = vld [vmem:[%s3670_s0 + $0x48] sm:$0xff] }
 0x2ba   :  { %v510_v29 = vsub.f32 1.0, %v509_v12  ;;  %v477_v39 = vmul.f32 %v2819_v1, %v476_v33  ;;  %vm1120_vm7 = vmor %vm1118_vm3, %vm1119_vm2 }
 0x2bb   :  { %v1115_v62 = vsub.f32 1.0, %v1114_v26  ;;  %v1054_v9 = vsel %vm168_vm1, %v3023_v47, 0.0 }
 0x2bc   :  { %v511_v42 = vmul.f32 %v2420_v10, %v510_v29  ;;  %v963_v36 = vsub.f32 %v477_v39, %v2802_v3  ;;  %1055 = vadd.xlane.f32.xlu2 %v1054_v9 }
 0x2bd   :  { %v1116_v43 = vmul.f32 %v2422_v21, %v1115_v62  ;;  %2184 = vmatmul.msk.f32.gmra.mxu1 %vm54_vm0, %v3035_v55  ;;  %v2474_v62 = vmov 1  }
 0x2be   :  { %v512_v1 = vadd.f32 %v2420_v10, %v511_v42  ;;  %vm979_vm5 = vcmp.ge.f32.partialorder %v963_v36, 0.0 }
 0x2bf   :  { %v1117_v17 = vadd.f32 %v2422_v21, %v1116_v43  ;;  %v2174_v3 = vsel %vm979_vm5, 1.0, %v2470_v37 }
 0x2c0   :  { %v516_v27 = vsel %vm515_vm6, %v2420_v10, %v512_v1  ;;  %v3030_v30 = vmul.f32 %v2174_v3, %v963_v36 }
 0x2c1   :  { %v1121_v15 = vsel %vm1120_vm7, %v2422_v21, %v1117_v17  ;;  %v521_v58 = vsel %vm518_vm8, %v520_v53, %v516_v27 }
 0x2c2   :  { %v1126_v25 = vsel %vm1123_vm9, %v1125_v57, %v1121_v15  ;;  %v522_v22 = vmul.f32 %v2828_v4, %v521_v58  ;;  %v1063_v56 = vsel %vm168_vm1, %v3030_v30, 0.0  ;;  %v3100_v15 = vld [vmem:[%s3670_s0 + $0x58] sm:$0xff] }
 0x2c3   :  { %v1127_v44 = vmul.f32 %v1126_v25, %v2830_v6  ;;  %v3050_v6 = vld [vmem:[%s3670_s0 + $0x28] sm:$0xff] }
 0x2c4   :  { %v966_v8 = vsub.f32 %v522_v22, %v2846_v45  ;;  %1064 = vadd.xlane.f32.xlu2 %v1063_v56  ;;  %v3068_v45 = vld [vmem:[%s3670_s0 + $0x38] sm:$0xff] }
 0x2c5   :  { %v1353_v5 = vmul.f32 2.0, %v1127_v44  ;;  %2185 = vmatmul.msk.f32.gmra.mxu1 %vm54_vm0, %v3050_v6 }
 0x2c6   :  { %vm982_vm10 = vcmp.ge.f32.partialorder %v966_v8, 0.0 }
 0x2c7   :  { %1695 = vperm.xlu1 %2240, %v1353_v5   ;;  %1615 = vperm.xlu0 %2239, %v1353_v5   ;;  %v2177_v28 = vsel %vm982_vm10, 1.0, %v2470_v37  ;;  %v3061_v37 = vld [vmem:[%s3670_s0 + $0x30] sm:$0xff] }
 0x2c8   :  { %v3045_v34 = vmul.f32 %v2177_v28, %v966_v8 }
 0x2ca   :  { %v1072_v4 = vsel %vm168_vm1, %v3045_v34, 0.0  ;;  %vm1083_vm1 = vcmp.eq.f32.partialorder %v1041_v2, 0.0 }
 0x2cb   :  { %v1099_v10 = vsel %vm1083_vm1, 1.0, %v1041_v2 }
 0x2cc   :  { %1073 = vadd.xlane.f32.xlu2 %v1072_v4  ;;  %2423 = vrcp.f32 %v1099_v10  ;;  %v1154_v57 = vand.u32 2147483648, %v1099_v10  ;;  %vm1148_vm5 = vweird.f32 %v1099_v10  ;;  %v1152_v58 = vand.u32 2147483647, %v1099_v10 }
 0x2cd   :  { %2186 = vmatmul.msk.f32.gmra.mxu1 %vm54_vm0, %v3061_v37 }
 0x2ce   :  { %vm1153_vm7 = vcmp.eq.f32.partialorder %v1152_v58, 8.507059e+37 }
 0x2cf   :  { %2242 = vset.pattern.permute.xlu1 %v2471_v23  ;;  %2241 = vset.pattern.permute.xlu0 %v2473_v19 }
 0x2d2   :  { %v2424_v12 = vpop.eup %2423 }
 0x2d3   :  { %v1144_v50 = vmul.f32 %v2424_v12, %v1099_v10  ;;  %vm1149_vm3 = vweird.f32 %v2424_v12  ;;  %v3109_v10 = vld [vmem:[%s3670_s0 + $0x60] sm:$0xff] }
 0x2d4   :  { %vm1150_vm6 = vmor %vm1148_vm5, %vm1149_vm3 }
 0x2d5   :  { %2187 = vmatmul.msk.f32.gmra.mxu1 %vm54_vm0, %v3068_v45  ;;  %v1145_v29 = vsub.f32 1.0, %v1144_v50 }
 0x2d7   :  { %v1146_v35 = vmul.f32 %v2424_v12, %v1145_v29 }
 0x2d9   :  { %v1147_v9 = vadd.f32 %v2424_v12, %v1146_v35  ;;  %v3120_v35 = vld [vmem:[%s3670_s0 + $0x68] sm:$0xff] }
 0x2db   :  { %v1151_v22 = vsel %vm1150_vm6, %v2424_v12, %v1147_v9 }
 0x2dd   :  { %2188 = vmatmul.msk.f32.gmra.mxu1 %vm54_vm0, %v3075_v49 }
 0x2e4   :  { %1440 = vperm.xlu2 %2237, %v1353_v5  }
 0x2e5   :  { %v1038_v38 = vpop.xlane.xlu0 %1037  ;;  %2189 = vmatmul.msk.f32.gmra.mxu1 %vm54_vm0, %v3082_v63 }
 0x2e6   :  { %vm1082_vm11 = vcmp.eq.f32.partialorder %v1038_v38, 0.0 }
 0x2e7   :  { %v1098_v21 = vsel %vm1082_vm11, 1.0, %v1038_v38 }
 0x2e8   :  { %2425 = vrcp.f32 %v1098_v21  ;;  %v1139_v31 = vand.u32 2147483648, %v1098_v21  ;;  %v1137_v43 = vand.u32 2147483647, %v1098_v21  ;;  %vm1133_vm15 = vweird.f32 %v1098_v21 }
 0x2ea   :  { %v1140_v53 = vor.u32 1.1754944e-38, %v1139_v31  ;;  %vm1138_vm4 = vcmp.eq.f32.partialorder %v1137_v43, 8.507059e+37 }
 0x2ec   :  { %2238 = vset.pattern.permute.xlu2 %v2474_v62 }
 0x2ed   :  { %v1050_v26 = vpop.xlane.xlu0 %1049  ;;  %1535 = vperm.xlu2 %2238, %v1353_v5   ;;  %2190 = vmatmul.msk.f32.gmra.mxu1 %vm54_vm0, %v3090_v32  ;;  %v1155_v5 = vor.u32 1.1754944e-38, %v1154_v57 }
 0x2ee   :  { %v2426_v33 = vpop.eup %2425  ;;  %vm1086_vm12 = vcmp.eq.f32.partialorder %v1050_v26, 0.0 }
 0x2ef   :  { %v1129_v39 = vmul.f32 %v2426_v33, %v1098_v21  ;;  %v3094_v42 = vsel %vm1086_vm12, 1.0, %v1050_v26  ;;  %vm1134_vm13 = vweird.f32 %v2426_v33  ;;  %v1156_v4 = vsel %vm1153_vm7, %v1155_v5, %v1151_v22 }
 0x2f0   :  { %2427 = vrcp.f32 %v3094_v42  ;;  %vm1135_vm2 = vmor %vm1133_vm15, %vm1134_vm13  ;;  %v1157_v21 = vmul.f32 %v1156_v4, %v2837_v40  ;;  %vm1193_vm12 = vweird.f32 %v3094_v42 }
 0x2f1   :  { %v1130_v54 = vsub.f32 1.0, %v1129_v39 }
 0x2f2   :  { %v1044_v14 = vpop.xlane.xlu1 %1043  ;;  %v1355_v29 = vmul.f32 2.0, %v1157_v21 }
 0x2f3   :  { %v1131_v36 = vmul.f32 %v2426_v33, %v1130_v54  ;;  %vm1084_vm14 = vcmp.eq.f32.partialorder %v1044_v14, 0.0 }
 0x2f4   :  { %v1100_v17 = vsel %vm1084_vm14, 1.0, %v1044_v14  ;;  %v1199_v14 = vand.u32 2147483648, %v3094_v42 }
 0x2f5   :  { %v1132_v1 = vadd.f32 %v2426_v33, %v1131_v36  ;;  %2429 = vrcp.f32 %v1100_v17  ;;  %2191 = vmatmul.msk.f32.gmra.mxu1 %vm54_vm0, %v3100_v15  ;;  %v1169_v12 = vand.u32 2147483648, %v1100_v17  ;;  %vm1163_vm9 = vweird.f32 %v1100_v17 }
 0x2f6   :  { %v2428_v44 = vpop.eup %2427  ;;  %v1200_v9 = vor.u32 1.1754944e-38, %v1199_v14 }
 0x2f7   :  { %v1136_v3 = vsel %vm1135_vm2, %v2426_v33, %v1132_v1  ;;  %v1189_v2 = vmul.f32 %v2428_v44, %v3094_v42  ;;  %v1167_v33 = vand.u32 2147483647, %v1100_v17  ;;  %v1170_v39 = vor.u32 1.1754944e-38, %v1169_v12 }
 0x2f8   :  { %v1141_v27 = vsel %vm1138_vm4, %v1140_v53, %v1136_v3  ;;  %vm1194_vm11 = vweird.f32 %v2428_v44  ;;  %v1197_v1 = vand.u32 2147483647, %v3094_v42 }
 0x2f9   :  { %v1142_v25 = vmul.f32 %v1141_v27, %v2871_v51  ;;  %v1190_v50 = vsub.f32 1.0, %v1189_v2  ;;  %vm1168_vm1 = vcmp.eq.f32.partialorder %v1167_v33, 8.507059e+37  ;;  %vm1195_vm13 = vmor %vm1193_vm12, %vm1194_vm11  ;;  %v3147_v27 = vld [vmem:[%s3670_s0 + $0x78] sm:$0xff] }
 0x2fa   :  { %vm1198_vm14 = vcmp.eq.f32.partialorder %v1197_v1, 8.507059e+37  ;;  %v1982_v33 = vld [vmem:[%s3674_s6 + $0x18] sm:$0xff] }
 0x2fb   :  { %v2430_v56 = vpop.eup %2429  ;;  %v1354_v8 = vmul.f32 2.0, %v1142_v25  ;;  %v1191_v54 = vmul.f32 %v2428_v44, %v1190_v50  ;;  %v1053_v25 = vpop.xlane.xlu1 %1052  ;;  %v1844_v50 = vld [vmem:[%s3673_s1 + $0x18] sm:$0xff]  ;;  %2043 = vmatpush.msra.mxu3 %v1982_v33 }
 0x2fc   :  { %v1159_v28 = vmul.f32 %v2430_v56, %v1100_v17  ;;  %vm1164_vm8 = vweird.f32 %v2430_v56  ;;  %vm1087_vm3 = vcmp.eq.f32.partialorder %v1053_v25, 0.0  ;;  %1910 = vmatpush.msra.mxu2 %v1844_v50 }
 0x2fd   :  { %1619 = vperm.xlu1 %2242, %v1354_v8   ;;  %1539 = vperm.xlu2 %2238, %v1354_v8   ;;  %vm1165_vm10 = vmor %vm1163_vm9, %vm1164_vm8  ;;  %v1192_v36 = vadd.f32 %v2428_v44, %v1191_v54  ;;  %v3162_v2 = vsel %vm1087_vm3, 1.0, %v1053_v25  ;;  %v1981_v54 = vld [vmem:[%s3674_s6 + $0x10] sm:$0xff]  ;;  %v1980_v25 = vld [vmem:[%s3674_s6 + $0x8] sm:$0xff] }
 0x2fe   :  { %v1160_v38 = vsub.f32 1.0, %v1159_v28  ;;  %1445 = vperm.xlu0 %2241, %v1354_v8   ;;  %2192 = vmatmul.msk.f32.gmra.mxu1 %vm54_vm0, %v3109_v10 }
 0x2ff   :  { %v1196_v53 = vsel %vm1195_vm13, %v2428_v44, %v1192_v36  ;;  %v1842_v36 = vld [vmem:[%s3673_s1 + $0x8] sm:$0xff]  ;;  %2044 = vmatpush.msra.mxu3 %v1981_v54 }
 0x300   :  { %v1161_v51 = vmul.f32 %v2430_v56, %v1160_v38  ;;  %v1201_v3 = vsel %vm1198_vm14, %v1200_v9, %v1196_v53 }
 0x301   :  { %v1202_v42 = vmul.f32 %v1201_v3, %v2882_v7  ;;  %v1059_v7 = vpop.xlane.xlu0 %1058  ;;  %2045 = vmatpush.msra.mxu3 %v1980_v25 }
 0x302   :  { %v1162_v26 = vadd.f32 %v2430_v56, %v1161_v51  ;;  %vm1089_vm15 = vcmp.eq.f32.partialorder %v1059_v7, 0.0 }
 0x303   :  { %v3140_v57 = vmul.f32 2.0, %v1202_v42  ;;  %v3154_v22 = vsel %vm1089_vm15, 1.0, %v1059_v7  ;;  %v3164_v38 = vpop.xlane.xlu1 %1061 }
 0x304   :  { %v1166_v31 = vsel %vm1165_vm10, %v2430_v56, %v1162_v26  ;;  %v1843_v26 = vld [vmem:[%s3673_s1 + $0x10] sm:$0xff]  ;;  %vm1238_vm14 = vweird.f32 %v3154_v22 }
 0x305   :  { %2244 = vset.pattern.permute.xlu1 %v2473_v19  ;;  %2243 = vset.pattern.permute.xlu2 %v2472_v41  ;;  %v1171_v40 = vsel %vm1168_vm1, %v1170_v39, %v1166_v31 }
 0x306   :  { %2245 = vset.pattern.permute.xlu0 %v2474_v62  ;;  %1450 = vperm.xlu1 %2244, %v1355_v29   ;;  %v1172_v43 = vmul.f32 %v1171_v40, %v2901_v60  ;;  %v3133_v60 = vld [vmem:[%s3670_s0 + $0x70] sm:$0xff] }
 0x307   :  { %1699 = vperm.xlu2 %2243, %v1354_v8   ;;  %1543 = vperm.xlu0 %2245, %v1355_v29  }
 0x308   :  { %2193 = vmatmul.msk.f32.gmra.mxu1 %vm54_vm0, %v3120_v35  ;;  %v1356_v17 = vmul.f32 2.0, %v1172_v43  ;;  %1911 = vmatpush.msra.mxu2 %v1843_v26 }
 0x30a   :  { %1912 = vmatpush.msra.mxu2 %v1842_v36  ;;  %v1242_v36 = vand.u32 2147483647, %v3154_v22 }
 0x30c   :  { %vm1243_vm3 = vcmp.eq.f32.partialorder %v1242_v36, 8.507059e+37 }
 0x30e   :  { %2246 = vset.pattern.permute.xlu1 %v2471_v23 }
 0x30f   :  { %1703 = vperm.xlu2 %2243, %v1355_v29   ;;  %2250 = vset.pattern.permute.xlu0 %v2472_v41 }
 0x310   :  { %1623 = vperm.xlu1 %2246, %v1355_v29   ;;  %1707 = vperm.xlu0 %2250, %v1356_v17  }
 0x311   :  { %2194 = vmatmul.msk.f32.gmra.mxu1 %vm54_vm0, %v3133_v60 }
 0x317   :  { %2247 = vset.pattern.permute.xlu2 %v2473_v19 }
 0x318   :  { %2248 = vset.pattern.permute.xlu1 %v2474_v62  ;;  %1455 = vperm.xlu2 %2247, %v1356_v17  }
 0x319   :  { %2256 = vset.pattern.permute.xlu0 %v2471_v23  ;;  %1547 = vperm.xlu1 %2248, %v1356_v17  }
 0x31a   :  { %1635 = vperm.xlu0 %2256, %v3140_v57   ;;  %2195 = vmatmul.msk.f32.gmra.mxu1 %vm54_vm0, %v3147_v27 }
 0x320   :  { %2249 = vset.pattern.permute.xlu2 %v2471_v23 }
 0x321   :  { %1627 = vperm.xlu2 %2249, %v1356_v17   ;;  %2251 = vset.pattern.permute.xlu1 %v2473_v19 }
 0x322   :  { %2261 = vset.pattern.permute.xlu0 %v2474_v62 }
 0x327   :  { %v1047_v58 = vpop.xlane.xlu2 %1046 }
 0x328   :  { %vm1085_vm2 = vcmp.eq.f32.partialorder %v1047_v58, 0.0 }
 0x329   :  { %v1101_v44 = vsel %vm1085_vm2, 1.0, %v1047_v58  ;;  %v1841_v58 = vld [vmem:[%s3673_s1] sm:$0xff] }
 0x32a   :  { %2431 = vrcp.f32 %v1101_v44  ;;  %v1184_v12 = vand.u32 2147483648, %v1101_v44  ;;  %v1182_v39 = vand.u32 2147483647, %v1101_v44  ;;  %vm1178_vm6 = vweird.f32 %v1101_v44  ;;  %1913 = vmatpush.msra.mxu2 %v1841_v58 }
 0x32b   :  { %2433 = vrcp.f32 %v3154_v22  ;;  %2196 = vmatmul.msk.f32.vlgmr.msra.gmra.mxu2 %vm54_vm0, %v2959_v0 }
 0x32c   :  { %v1185_v14 = vor.u32 1.1754944e-38, %v1184_v12  ;;  %vm1183_vm8 = vcmp.eq.f32.partialorder %v1182_v39, 8.507059e+37 }
 0x32f   :  { %v1056_v56 = vpop.xlane.xlu2 %1055 }
 0x330   :  { %v2432_v5 = vpop.eup %2431  ;;  %vm1088_vm4 = vcmp.eq.f32.partialorder %v1056_v56, 0.0 }
 0x331   :  { %v1174_v8 = vmul.f32 %v2432_v5, %v1101_v44  ;;  %v3157_v28 = vsel %vm1088_vm4, 1.0, %v1056_v56  ;;  %v3160_v4 = vpop.eup %2433  ;;  %vm1179_vm5 = vweird.f32 %v2432_v5  ;;  %v1979_v44 = vld [vmem:[%s3674_s6] sm:$0xff]  ;;  %v3198_v56 = vpop.xlane.xlu1 %1070 }
 0x332   :  { %2435 = vrcp.f32 %v3157_v28  ;;  %v1234_v29 = vmul.f32 %v3160_v4, %v3154_v22  ;;  %vm1180_vm7 = vmor %vm1178_vm6, %vm1179_vm5  ;;  %v1227_v12 = vand.u32 2147483647, %v3157_v28  ;;  %vm1223_vm1 = vweird.f32 %v3157_v28  ;;  %2046 = vmatpush.msra.mxu3 %v1979_v44 }
 0x333   :  { %v1175_v51 = vsub.f32 1.0, %v1174_v8  ;;  %2437 = vrcp.f32 %v3162_v2  ;;  %v1229_v8 = vand.u32 2147483648, %v3157_v28  ;;  %vm1239_vm12 = vweird.f32 %v3160_v4  ;;  %2197 = vmatmul.msk.f32.gmra.mxu2 %vm54_vm0, %v2967_v18 }
 0x334   :  { %v1235_v53 = vsub.f32 1.0, %v1234_v29  ;;  %vm1228_vm13 = vcmp.eq.f32.partialorder %v1227_v12, 8.507059e+37  ;;  %vm3224_vm2 = vmor %vm1238_vm14, %vm1239_vm12  ;;  %v1214_v44 = vand.u32 2147483648, %v3162_v2  ;;  %vm1093_vm5 = vcmp.eq.f32.partialorder %v3198_v56, 0.0  ;;  %v1390_v12 = vpop.f32.mrf.mxu1 }
 0x335   :  { %v1176_v21 = vmul.f32 %v2432_v5, %v1175_v51  ;;  %v1230_v39 = vor.u32 1.1754944e-38, %v1229_v8  ;;  %vm1208_vm6 = vweird.f32 %v3162_v2  ;;  %v1212_v8 = vand.u32 2147483647, %v3162_v2 }
 0x337   :  { %v1177_v31 = vadd.f32 %v2432_v5, %v1176_v21  ;;  %v1065_v40 = vpop.xlane.xlu2 %1064  ;;  %v1068_v21 = vpop.xlane.xlu0 %1067 }
 0x338   :  { %v2436_v43 = vpop.eup %2435  ;;  %vm1091_vm9 = vcmp.eq.f32.partialorder %v1065_v40, 0.0  ;;  %vm1092_vm15 = vcmp.eq.f32.partialorder %v1068_v21, 0.0 }
 0x339   :  { %v1219_v1 = vmul.f32 %v2436_v43, %v3157_v28  ;;  %v1181_v17 = vsel %vm1180_vm7, %v2432_v5, %v1177_v31  ;;  %v3186_v42 = vpop.eup %2437  ;;  %vm1224_vm10 = vweird.f32 %v2436_v43  ;;  %v3201_v51 = vsel %vm1091_vm9, 1.0, %v1065_v40 }
 0x33a   :  { %v1186_v3 = vsel %vm1183_vm8, %v1185_v14, %v1181_v17  ;;  %v1204_v26 = vmul.f32 %v3186_v42, %v3162_v2  ;;  %vm1225_vm11 = vmor %vm1223_vm1, %vm1224_vm10  ;;  %2439 = vrcp.f32 %v3201_v51  ;;  %v1244_v28 = vand.u32 2147483648, %v3154_v22 }
 0x33b   :  { %v1220_v9 = vsub.f32 1.0, %v1219_v1  ;;  %v1187_v7 = vmul.f32 %v1186_v3, %v3000_v11  ;;  %v1236_v11 = vmul.f32 %v3160_v4, %v1235_v53  ;;  %v3240_v3 = vsel %vm1092_vm15, 1.0, %v1068_v21  ;;  %2198 = vmatmul.msk.f32.gmra.mxu2 %vm54_vm0, %v2990_v46 }
 0x33c   :  { %v1205_v31 = vsub.f32 1.0, %v1204_v26  ;;  %v1245_v22 = vor.u32 1.1754944e-38, %v1244_v28  ;;  %2441 = vrcp.f32 %v3240_v3  ;;  %vm1209_vm4 = vweird.f32 %v3186_v42 }
 0x33d   :  { %v1221_v5 = vmul.f32 %v2436_v43, %v1220_v9  ;;  %v3205_v50 = vmul.f32 2.0, %v1187_v7  ;;  %v1237_v0 = vadd.f32 %v3160_v4, %v1236_v11  ;;  %v3242_v7 = vpop.xlane.xlu1 %1079  ;;  %vm3259_vm7 = vmor %vm1208_vm6, %vm1209_vm4  ;;  %vm1774_vm8 = vcmask 64512  }
 0x33e   :  { %vm1791_vm9 = vcmask 130048   ;;  %vm1213_vm10 = vcmp.eq.f32.partialorder %v1212_v8, 8.507059e+37  ;;  %vm1808_vm1 = vcmask 195584  }
 0x33f   :  { %v1222_v33 = vadd.f32 %v2436_v43, %v1221_v5  ;;  %v3212_v29 = vpop.xlane.xlu2 %1073  ;;  %1460 = vperm.xlu1 %2251, %v3205_v50   ;;  %1631 = vperm.xlu2 %2249, %v3205_v50   ;;  %v3230_v17 = vpop.xlane.xlu0 %1076  ;;  %v1241_v9 = vsel %vm3224_vm2, %v3160_v4, %v1237_v0  ;;  %vm1090_vm2 = vcmp.eq.f32.partialorder %v3164_v38, 0.0 }
 0x340   :  { %v1246_v18 = vsel %vm1243_vm3, %v1245_v22, %v1241_v9  ;;  %vm1094_vm12 = vcmp.eq.f32.partialorder %v3212_v29, 0.0  ;;  %vm1095_vm4 = vcmp.eq.f32.partialorder %v3230_v17, 0.0 }
 0x341   :  { %v1226_v54 = vsel %vm1225_vm11, %v2436_v43, %v1222_v33  ;;  %v3228_v43 = vpop.eup %2439  ;;  %v1247_v5 = vmul.f32 %v1246_v18, %v2903_v13  ;;  %v1215_v33 = vor.u32 1.1754944e-38, %v1214_v44  ;;  %v1272_v18 = vand.u32 2147483647, %v3201_v51 }
 0x342   :  { %v1231_v40 = vsel %vm1228_vm13, %v1230_v39, %v1226_v54  ;;  %v1264_v25 = vmul.f32 %v3228_v43, %v3201_v51  ;;  %v3266_v39 = vsel %vm1093_vm5, 1.0, %v3198_v56  ;;  %v3271_v0 = vpop.eup %2441  ;;  %vm1269_vm11 = vweird.f32 %v3228_v43 }
 0x343   :  { %v1232_v14 = vmul.f32 %v1231_v40, %v3023_v47  ;;  %v1206_v47 = vmul.f32 %v3186_v42, %v1205_v31  ;;  %v3273_v40 = vmul.f32 2.0, %v1247_v5  ;;  %v1279_v1 = vmul.f32 %v3271_v0, %v3240_v3  ;;  %2199 = vmatmul.msk.f32.gmra.mxu2 %vm54_vm0, %v3012_v59 }
 0x344   :  { %v1265_v11 = vsub.f32 1.0, %v1264_v25  ;;  %2443 = vrcp.f32 %v3266_v39  ;;  %v1274_v25 = vand.u32 2147483648, %v3201_v51  ;;  %vm1268_vm13 = vweird.f32 %v3201_v51 }
 0x345   :  { %v3232_v53 = vmul.f32 2.0, %v1232_v14  ;;  %v1207_v4 = vadd.f32 %v3186_v42, %v1206_v47  ;;  %v1696_v54 = vpop.permute.xlu1 %1695  ;;  %vm3298_vm14 = vmor %vm1268_vm13, %vm1269_vm11  ;;  %vm1273_vm15 = vcmp.eq.f32.partialorder %v1272_v18, 8.507059e+37  ;;  %vm1284_vm3 = vweird.f32 %v3271_v0 }
 0x346   :  { %v1266_v46 = vmul.f32 %v3228_v43, %v1265_v11  ;;  %v1758_v56 = vmul.f32 %v1696_v54, %v1390_v12  ;;  %v1275_v8 = vor.u32 1.1754944e-38, %v1274_v25  ;;  %vm1283_vm5 = vweird.f32 %v3240_v3 }
 0x347   :  { %v1441_v58 = vpop.permute.xlu2 %1440  ;;  %2252 = vset.pattern.permute.xlu1 %v2474_v62  ;;  %2254 = vset.pattern.permute.xlu2 %v2473_v19  ;;  %v1616_v26 = vpop.permute.xlu0 %1615  ;;  %v1211_v2 = vsel %vm3259_vm7, %v3186_v42, %v1207_v4  ;;  %vm3336_vm6 = vmor %vm1283_vm5, %vm1284_vm3  ;;  %vm1298_vm11 = vweird.f32 %v3266_v39 }
 0x348   :  { %1563 = vperm.xlu0 %2261, %v3232_v53   ;;  %1551 = vperm.xlu1 %2252, %v3205_v50   ;;  %v1518_v28 = vmul.f32 %v1441_v58, %v1390_v12  ;;  %v1678_v36 = vmul.f32 %v1616_v26, %v1390_v12  ;;  %v1216_v42 = vsel %vm1213_vm10, %v1215_v33, %v1211_v2  ;;  %v3330_v26 = vsel %vm1090_vm2, 1.0, %v3164_v38 }
 0x349   :  { %1465 = vperm.xlu2 %2254, %v3140_v57   ;;  %v1267_v47 = vadd.f32 %v3228_v43, %v1266_v46  ;;  %v1217_v58 = vmul.f32 %v1216_v42, %v2913_v61  ;;  %v3305_v61 = vsel %vm1094_vm12, 1.0, %v3212_v29  ;;  %vm1253_vm5 = vweird.f32 %v3330_v26 }
 0x34a   :  { %v3302_v44 = vpop.eup %2443  ;;  %2445 = vrcp.f32 %v3305_v61 }
 0x34b   :  { %v3307_v5 = vmul.f32 2.0, %v1217_v58  ;;  %v1271_v59 = vsel %vm3298_vm14, %v3228_v43, %v1267_v47  ;;  %v1294_v29 = vmul.f32 %v3302_v44, %v3266_v39  ;;  %2200 = vmatmul.msk.f32.gmra.mxu2 %vm54_vm0, %v3035_v55  ;;  %2447 = vrcp.f32 %v3330_v26  ;;  %v1393_v58 = vpop.f32.mrf.mxu1 }
 0x34c   :  { %v1276_v21 = vsel %vm1273_vm15, %v1275_v8, %v1271_v59  ;;  %vm1299_vm10 = vweird.f32 %v3302_v44  ;;  %vm1313_vm15 = vweird.f32 %v3305_v61 }
 0x34d   :  { %v1277_v43 = vmul.f32 %v1276_v21, %v3030_v30  ;;  %v1295_v33 = vsub.f32 1.0, %v1294_v29  ;;  %vm3371_vm12 = vmor %vm1298_vm11, %vm1299_vm10 }
 0x34f   :  { %v1536_v13 = vpop.permute.xlu2 %1535  ;;  %v3346_v30 = vmul.f32 2.0, %v1277_v43 }
 0x350   :  { %v1598_v31 = vmul.f32 %v1536_v13, %v1390_v12  ;;  %2263 = vset.pattern.permute.xlu0 %v2473_v19  ;;  %2253 = vset.pattern.permute.xlu1 %v2472_v41  ;;  %v1289_v12 = vand.u32 2147483648, %v3240_v3  ;;  %v1287_v13 = vand.u32 2147483647, %v3240_v3  ;;  %v3334_v55 = vpop.eup %2445 }
 0x351   :  { %2255 = vset.pattern.permute.xlu2 %v2474_v62  ;;  %1480 = vperm.xlu0 %2263, %v3273_v40   ;;  %vm1314_vm14 = vweird.f32 %v3334_v55 }
 0x352   :  { %v1775_v14 = vsel %vm1774_vm8, %v1518_v28, %v1598_v31  ;;  %1711 = vperm.xlu1 %2253, %v3205_v50   ;;  %1555 = vperm.xlu2 %2255, %v3140_v57   ;;  %v1280_v50 = vsub.f32 1.0, %v1279_v1  ;;  %v3341_v28 = vsel %vm1095_vm4, 1.0, %v3230_v17  ;;  %v1290_v3 = vor.u32 1.1754944e-38, %v1289_v12  ;;  %vm3403_vm2 = vmor %vm1313_vm15, %vm1314_vm14 }
 0x353   :  { %v1792_v9 = vsel %vm1791_vm9, %v1775_v14, %v1678_v36  ;;  %v1296_v31 = vmul.f32 %v3302_v44, %v1295_v33  ;;  %vm1288_vm7 = vcmp.eq.f32.partialorder %v1287_v13, 8.507059e+37  ;;  %2449 = vrcp.f32 %v3341_v28  ;;  %2201 = vmatmul.msk.f32.gmra.mxu2 %vm54_vm0, %v3050_v6  ;;  %v3363_v36 = vpop.eup %2447 }
 0x354   :  { %v1809_v22 = vsel %vm1808_vm1, %v1792_v9, %v1758_v56  ;;  %v1281_v51 = vmul.f32 %v3271_v0, %v1280_v50  ;;  %v1309_v17 = vmul.f32 %v3334_v55, %v3305_v61  ;;  %v1304_v56 = vand.u32 2147483648, %v3266_v39 }
 0x355   :  { %1825 = vst.msk [vmem:[#allocation2] sm:$0xff] %vm54_vm0, %v1809_v22  ;;  %v1302_v1 = vand.u32 2147483647, %v3266_v39  ;;  %v1249_v47 = vmul.f32 %v3363_v36, %v3330_v26  ;;  %v1319_v12 = vand.u32 2147483648, %v3305_v61  ;;  %v1317_v13 = vand.u32 2147483647, %v3305_v61 }
 0x356   :  { %v1310_v14 = vsub.f32 1.0, %v1309_v17  ;;  %v1305_v25 = vor.u32 1.1754944e-38, %v1304_v56  ;;  %vm1254_vm4 = vweird.f32 %v3363_v36  ;;  %v1259_v56 = vand.u32 2147483648, %v3330_v26 }
 0x357   :  { %v1540_v54 = vpop.permute.xlu2 %1539  ;;  %vm1303_vm13 = vcmp.eq.f32.partialorder %v1302_v1, 8.507059e+37  ;;  %v1320_v17 = vor.u32 1.1754944e-38, %v1319_v12  ;;  %vm1318_vm3 = vcmp.eq.f32.partialorder %v1317_v13, 8.507059e+37  ;;  %v1334_v1 = vand.u32 2147483648, %v3341_v28 }
 0x358   :  { %v1311_v39 = vmul.f32 %v3334_v55, %v1310_v14  ;;  %v1599_v8 = vmul.f32 %v1540_v54, %v1393_v58  ;;  %v1257_v14 = vand.u32 2147483647, %v3330_v26  ;;  %vm1328_vm10 = vweird.f32 %v3341_v28 }
 0x359   :  { %2266 = vset.pattern.permute.xlu0 %v2472_v41  ;;  %v3369_v22 = vpop.eup %2449  ;;  %vm1096_vm14 = vcmp.eq.f32.partialorder %v3242_v7, 0.0 }
 0x35a   :  { %1715 = vperm.xlu1 %2253, %v3140_v57   ;;  %1559 = vperm.xlu2 %2255, %v3307_v5   ;;  %v1282_v57 = vadd.f32 %v3271_v0, %v1281_v51  ;;  %v1324_v4 = vmul.f32 %v3369_v22, %v3341_v28  ;;  %v1312_v21 = vadd.f32 %v3334_v55, %v1311_v39 }
 0x35b   :  { %1727 = vperm.xlu0 %2266, %v3273_v40   ;;  %2202 = vmatmul.msk.f32.gmra.mxu2 %vm54_vm0, %v3061_v37 }
 0x35c   :  { %v1963_v11 = vld [vmem:[#allocation2] sm:$0xff]  ;;  %v1286_v38 = vsel %vm3336_vm6, %v3271_v0, %v1282_v57  ;;  %v1297_v0 = vadd.f32 %v3302_v44, %v1296_v31  ;;  %v1325_v43 = vsub.f32 1.0, %v1324_v4  ;;  %v1316_v31 = vsel %vm3403_vm2, %v3334_v55, %v1312_v21 }
 0x35d   :  { %2212 = vmatmul.msk.f32.vlgmr.msra.gmra.mxu3 %vm54_vm0, %v1963_v11  ;;  %v1291_v46 = vsel %vm1288_vm7, %v1290_v3, %v1286_v38  ;;  %v1250_v11 = vsub.f32 1.0, %v1249_v47  ;;  %v1321_v55 = vsel %vm1318_vm3, %v1320_v17, %v1316_v31  ;;  %vm1329_vm6 = vweird.f32 %v3369_v22  ;;  %vm3428_vm7 = vmor %vm1253_vm5, %vm1254_vm4 }
 0x35e   :  { %v1292_v42 = vmul.f32 %v1291_v46, %v2915_v24  ;;  %v1301_v24 = vsel %vm3371_vm12, %v3302_v44, %v1297_v0  ;;  %v1322_v6 = vmul.f32 %v1321_v55, %v3045_v34  ;;  %v1332_v47 = vand.u32 2147483647, %v3341_v28  ;;  %vm3440_vm11 = vmor %vm1328_vm10, %vm1329_vm6 }
 0x35f   :  { %v1306_v29 = vsel %vm1303_vm13, %v1305_v25, %v1301_v24  ;;  %v1251_v2 = vmul.f32 %v3363_v36, %v1250_v11  ;;  %v1396_v25 = vpop.f32.mrf.mxu1  ;;  %vm1258_vm12 = vcmp.eq.f32.partialorder %v1257_v14, 8.507059e+37  ;;  %v1335_v4 = vor.u32 1.1754944e-38, %v1334_v1 }
 0x360   :  { %v3384_v50 = vmul.f32 2.0, %v1292_v42  ;;  %v1307_v54 = vmul.f32 %v1306_v29, %v2931_v48  ;;  %v1326_v48 = vmul.f32 %v3369_v22, %v1325_v43  ;;  %vm1333_vm13 = vcmp.eq.f32.partialorder %v1332_v47, 8.507059e+37 }
 0x361   :  { %v1700_v9 = vpop.permute.xlu2 %1699  ;;  %v1252_v0 = vadd.f32 %v3363_v36, %v1251_v2 }
 0x362   :  { %2257 = vset.pattern.permute.xlu1 %v2473_v19  ;;  %2259 = vset.pattern.permute.xlu2 %v2472_v41  ;;  %v1759_v57 = vmul.f32 %v1700_v9, %v1393_v58  ;;  %v3414_v61 = vmul.f32 2.0, %v1307_v54  ;;  %v1327_v42 = vadd.f32 %v3369_v22, %v1326_v48 }
 0x363   :  { %2272 = vset.pattern.permute.xlu0 %v2471_v23  ;;  %1470 = vperm.xlu1 %2257, %v3307_v5   ;;  %v1256_v26 = vsel %vm3428_vm7, %v3363_v36, %v1252_v0  ;;  %v3450_v36 = vmul.f32 2.0, %v1322_v6 }
 0x364   :  { %1719 = vperm.xlu2 %2259, %v3307_v5   ;;  %1655 = vperm.xlu0 %2272, %v3346_v30   ;;  %v1331_v28 = vsel %vm3440_vm11, %v3369_v22, %v1327_v42 }
 0x365   :  { %2203 = vmatmul.msk.f32.gmra.mxu2 %vm54_vm0, %v3068_v45 }
 0x367   :  { %v1399_v43 = vpop.f32.mrf.mxu1 }
 0x369   :  { %v1704_v3 = vpop.permute.xlu2 %1703 }
 0x36a   :  { %v1760_v22 = vmul.f32 %v1704_v3, %v1396_v25 }
 0x36b   :  { %2258 = vset.pattern.permute.xlu1 %v2471_v23 }
 0x36c   :  { %2260 = vset.pattern.permute.xlu2 %v2473_v19  ;;  %2273 = vset.pattern.permute.xlu0 %v2473_v19 }
 0x36d   :  { %1639 = vperm.xlu1 %2258, %v3307_v5   ;;  %1475 = vperm.xlu2 %2260, %v3232_v53  }
 0x36e   :  { %1495 = vperm.xlu0 %2273, %v3384_v50   ;;  %2204 = vmatmul.msk.f32.gmra.mxu2 %vm54_vm0, %v3075_v49 }
 0x36f   :  { %v1620_v18 = vpop.permute.xlu1 %1619 }
 0x370   :  { %v1679_v59 = vmul.f32 %v1620_v18, %v1393_v58  ;;  %v1446_v44 = vpop.permute.xlu0 %1445 }
 0x371   :  { %v1519_v51 = vmul.f32 %v1446_v44, %v1393_v58  ;;  %v1260_v58 = vor.u32 1.1754944e-38, %v1259_v56 }
 0x372   :  { %v1456_v39 = vpop.permute.xlu2 %1455 }
 0x373   :  { %v1776_v5 = vsel %vm1774_vm8, %v1519_v51, %v1599_v8  ;;  %v1336_v51 = vsel %vm1333_vm13, %v1335_v4, %v1331_v28  ;;  %v1521_v54 = vmul.f32 %v1456_v39, %v1399_v43 }
 0x374   :  { %v1793_v33 = vsel %vm1791_vm9, %v1776_v5, %v1679_v59  ;;  %v1261_v59 = vsel %vm1258_vm12, %v1260_v58, %v1256_v26  ;;  %v1337_v5 = vmul.f32 %v1336_v51, %v2982_v52 }
 0x375   :  { %v1810_v37 = vsel %vm1808_vm1, %v1793_v33, %v1759_v57  ;;  %1643 = vperm.xlu1 %2258, %v3232_v53   ;;  %2262 = vset.pattern.permute.xlu2 %v2472_v41  ;;  %v1262_v11 = vmul.f32 %v1261_v59, %v2924_v16 }
 0x376   :  { %1826 = vst.msk [vmem:[#allocation2 + $0x8] sm:$0xff] %vm54_vm0, %v1810_v37  ;;  %2277 = vset.pattern.permute.xlu0 %v2474_v62  ;;  %1723 = vperm.xlu2 %2262, %v3232_v53   ;;  %v3464_v49 = vmul.f32 2.0, %v1337_v5  ;;  %v3534_v5 = vld [vmem:[%s3675_s2] ss:$0 sm:$0xff] }
 0x377   :  { %1583 = vperm.xlu0 %2277, %v3414_v61   ;;  %2205 = vmatmul.msk.f32.gmra.mxu2 %vm54_vm0, %v3082_v63 }
 0x378   :  { %v1451_v46 = vpop.permute.xlu1 %1450 }
 0x379   :  { %v1544_v9 = vpop.permute.xlu0 %1543  ;;  %v1520_v34 = vmul.f32 %v1451_v46, %v1396_v25 }
 0x37a   :  { %v1600_v18 = vmul.f32 %v1544_v9, %v1396_v25 }
 0x37b   :  { %v1628_v12 = vpop.permute.xlu2 %1627 }
 0x37c   :  { %v1777_v29 = vsel %vm1774_vm8, %v1520_v34, %v1600_v18  ;;  %v1681_v13 = vmul.f32 %v1628_v12, %v1399_v43 }
 0x37d   :  { %v1964_v45 = vld [vmem:[#allocation2 + $0x8] sm:$0xff]  ;;  %2264 = vset.pattern.permute.xlu1 %v2474_v62 }
 0x37e   :  { %2213 = vmatmul.msk.f32.gmra.mxu3 %vm54_vm0, %v1964_v45  ;;  %2265 = vset.pattern.permute.xlu2 %v2471_v23 }
 0x37f   :  { %1567 = vperm.xlu1 %2264, %v3273_v40   ;;  %2281 = vset.pattern.permute.xlu0 %v2471_v23 }
 0x380   :  { %1647 = vperm.xlu2 %2265, %v3273_v40   ;;  %1667 = vperm.xlu0 %2281, %v3450_v36   ;;  %v1362_v40 = vmul.f32 2.0, %v1262_v11 }
 0x381   :  { %2206 = vmatmul.msk.f32.gmra.mxu2 %vm54_vm0, %v3090_v32 }
 0x382   :  { %v1624_v44 = vpop.permute.xlu1 %1623  ;;  %v1708_v33 = vpop.permute.xlu0 %1707 }
 0x383   :  { %v1680_v8 = vmul.f32 %v1624_v44, %v1396_v25  ;;  %v1761_v37 = vmul.f32 %v1708_v33, %v1399_v43 }
 0x385   :  { %v1794_v21 = vsel %vm1791_vm9, %v1777_v29, %v1680_v8 }
 0x386   :  { %v1811_v57 = vsel %vm1808_vm1, %v1794_v21, %v1760_v22 }
 0x387   :  { %1827 = vst.msk [vmem:[#allocation2 + $0x10] sm:$0xff] %vm54_vm0, %v1811_v57  ;;  %2267 = vset.pattern.permute.xlu1 %v2473_v19 }
 0x388   :  { %1651 = vperm.xlu2 %2265, %v1362_v40   ;;  %1485 = vperm.xlu1 %2267, %v1362_v40  }
 0x389   :  { %2286 = vset.pattern.permute.xlu0 %v2472_v41  ;;  %2207 = vmatmul.msk.f32.gmra.mxu2 %vm54_vm0, %v3100_v15  ;;  %v1112_v15 = vsel %vm1096_vm14, 1.0, %v3242_v7  ;;  %v1402_v7 = vpop.f32.mrf.mxu1 }
 0x38a   :  { %1751 = vperm.xlu0 %2286, %v3464_v49   ;;  %2451 = vrcp.f32 %v1112_v15  ;;  %v1349_v6 = vand.u32 2147483648, %v1112_v15  ;;  %vm1343_vm2 = vweird.f32 %v1112_v15  ;;  %v1347_v26 = vand.u32 2147483647, %v1112_v15 }
 0x38b   :  { %v1548_v16 = vpop.permute.xlu1 %1547 }
 0x38c   :  { %v1601_v52 = vmul.f32 %v1548_v16, %v1399_v43  ;;  %v1636_v58 = vpop.permute.xlu0 %1635  ;;  %v1350_v34 = vor.u32 1.1754944e-38, %v1349_v6  ;;  %vm1348_vm4 = vcmp.eq.f32.partialorder %v1347_v26, 8.507059e+37 }
 0x38e   :  { %v1778_v2 = vsel %vm1774_vm8, %v1521_v54, %v1601_v52  ;;  %v1965_v38 = vld [vmem:[#allocation2 + $0x10] sm:$0xff] }
 0x38f   :  { %v1795_v3 = vsel %vm1791_vm9, %v1778_v2, %v1681_v13  ;;  %2214 = vmatmul.msk.f32.gmra.mxu3 %vm54_vm0, %v1965_v38 }
 0x390   :  { %v1812_v31 = vsel %vm1808_vm1, %v1795_v3, %v1761_v37  ;;  %2270 = vset.pattern.permute.xlu2 %v2473_v19  ;;  %2268 = vset.pattern.permute.xlu1 %v2474_v62 }
 0x391   :  { %1828 = vst.msk [vmem:[#allocation2 + $0x18] sm:$0xff] %vm54_vm0, %v1812_v31  ;;  %1490 = vperm.xlu2 %2270, %v3346_v30   ;;  %1571 = vperm.xlu1 %2268, %v1362_v40  }
 0x392   :  { %2208 = vmatmul.msk.f32.gmra.mxu2 %vm54_vm0, %v3109_v10 }
 0x398   :  { %v1966_v63 = vld [vmem:[#allocation2 + $0x18] sm:$0xff] }
 0x399   :  { %2215 = vmatmul.msk.f32.gmra.mxu3 %vm54_vm0, %v1966_v63  ;;  %2271 = vset.pattern.permute.xlu2 %v2474_v62  ;;  %v1632_v48 = vpop.permute.xlu2 %1631 }
 0x39a   :  { %2269 = vset.pattern.permute.xlu1 %v2472_v41  ;;  %1575 = vperm.xlu2 %2271, %v3346_v30   ;;  %v1682_v42 = vmul.f32 %v1632_v48, %v1402_v7 }
 0x39b   :  { %1731 = vperm.xlu1 %2269, %v1362_v40   ;;  %2209 = vmatmul.msk.f32.gmra.mxu2 %vm54_vm0, %v3120_v35 }
 0x3a2   :  { %1579 = vperm.xlu2 %2271, %v3384_v50  }
 0x3a3   :  { %1735 = vperm.xlu1 %2269, %v3346_v30   ;;  %v1466_v32 = vpop.permute.xlu2 %1465  ;;  %2210 = vmatmul.msk.f32.gmra.mxu2 %vm54_vm0, %v3133_v60 }
 0x3aa   :  { %2275 = vset.pattern.permute.xlu2 %v2472_v41 }
 0x3ab   :  { %2274 = vset.pattern.permute.xlu1 %v2471_v23  ;;  %1739 = vperm.xlu2 %2275, %v3384_v50  }
 0x3ac   :  { %1659 = vperm.xlu1 %2274, %v3384_v50   ;;  %v1556_v10 = vpop.permute.xlu2 %1555  ;;  %v2452_v50 = vpop.eup %2451  ;;  %2211 = vmatmul.msk.f32.gmra.mxu2 %vm54_vm0, %v3147_v27 }
 0x3ad   :  { %v1339_v17 = vmul.f32 %v2452_v50, %v1112_v15  ;;  %vm1344_vm15 = vweird.f32 %v2452_v50  ;;  %v1405_v27 = vpop.f32.mrf.mxu1 }
 0x3ae   :  { %v1603_v45 = vmul.f32 %v1556_v10, %v1405_v27  ;;  %vm1345_vm3 = vmor %vm1343_vm2, %vm1344_vm15  ;;  %v1523_v24 = vmul.f32 %v1466_v32, %v1405_v27  ;;  %v1683_v28 = vmul.f32 %v1636_v58, %v1405_v27  ;;  %v1915_v40 = vpop.f32.mrf.mxu2 }
 0x3af   :  { %v1340_v46 = vsub.f32 1.0, %v1339_v17  ;;  %v1916_v12 = vadd.f32 %v3534_v5, %v1915_v40 }
 0x3b0   :  { %v1780_v18 = vsel %vm1774_vm8, %v1523_v24, %v1603_v45 }
 0x3b1   :  { %v1461_v30 = vpop.permute.xlu1 %1460  ;;  %v1341_v56 = vmul.f32 %v2452_v50, %v1340_v46  ;;  %v1797_v8 = vsel %vm1791_vm9, %v1780_v18, %v1683_v28 }
 0x3b2   :  { %v1522_v60 = vmul.f32 %v1461_v30, %v1402_v7 }
 0x3b3   :  { %1743 = vperm.xlu2 %2275, %v3414_v61  }
 0x3b4   :  { %2276 = vset.pattern.permute.xlu1 %v2473_v19  ;;  %v1560_v55 = vpop.permute.xlu2 %1559 }
 0x3b5   :  { %1500 = vperm.xlu1 %2276, %v3414_v61  }
 0x3ba   :  { %v1552_v35 = vpop.permute.xlu1 %1551  ;;  %v1564_v43 = vpop.permute.xlu0 %1563 }
 0x3bb   :  { %2280 = vset.pattern.permute.xlu2 %v2474_v62  ;;  %v1602_v0 = vmul.f32 %v1552_v35, %v1402_v7 }
 0x3bc   :  { %1587 = vperm.xlu2 %2280, %v3450_v36  }
 0x3bd   :  { %2278 = vset.pattern.permute.xlu1 %v2471_v23  ;;  %v1779_v14 = vsel %vm1774_vm8, %v1522_v60, %v1602_v0 }
 0x3be   :  { %1663 = vperm.xlu1 %2278, %v3414_v61   ;;  %v1342_v61 = vadd.f32 %v2452_v50, %v1341_v56  ;;  %v1796_v9 = vsel %vm1791_vm9, %v1779_v14, %v1682_v42  ;;  %v1720_v25 = vpop.permute.xlu2 %1719 }
 0x3c0   :  { %v1346_v39 = vsel %vm1345_vm3, %v2452_v50, %v1342_v61 }
 0x3c1   :  { %v1351_v44 = vsel %vm1348_vm4, %v1350_v34, %v1346_v39 }
 0x3c2   :  { %v1352_v29 = vmul.f32 %v1351_v44, %v2946_v20  ;;  %v1408_v20 = vpop.f32.mrf.mxu1 }
 0x3c3   :  { %v1764_v37 = vmul.f32 %v1720_v25, %v1408_v20  ;;  %v1481_v31 = vpop.permute.xlu0 %1480 }
 0x3c4   :  { %2283 = vset.pattern.permute.xlu2 %v2473_v19  ;;  %v1712_v53 = vpop.permute.xlu1 %1711  ;;  %v1368_v21 = vmul.f32 2.0, %v1352_v29 }
 0x3c5   :  { %1510 = vperm.xlu2 %2283, %v3464_v49   ;;  %v1762_v1 = vmul.f32 %v1712_v53, %v1402_v7 }
 0x3c6   :  { %2279 = vset.pattern.permute.xlu1 %v2473_v19 }
 0x3c7   :  { %1505 = vperm.xlu1 %2279, %v3450_v36   ;;  %v1813_v47 = vsel %vm1808_vm1, %v1796_v9, %v1762_v1  ;;  %v1476_v11 = vpop.permute.xlu2 %1475 }
 0x3c8   :  { %1829 = vst.msk [vmem:[#allocation2 + $0x20] sm:$0xff] %vm54_vm0, %v1813_v47 }
 0x3ca   :  { %v1411_v3 = vpop.f32.mrf.mxu1 }
 0x3cb   :  { %v1605_v63 = vmul.f32 %v1564_v43, %v1411_v3 }
 0x3cc   :  { %v1716_v4 = vpop.permute.xlu1 %1715 }
 0x3cd   :  { %2285 = vset.pattern.permute.xlu2 %v2471_v23  ;;  %v1763_v59 = vmul.f32 %v1716_v4, %v1405_v27  ;;  %v1728_v46 = vpop.permute.xlu0 %1727  ;;  %v1918_v27 = vpop.f32.mrf.mxu2 }
 0x3ce   :  { %1671 = vperm.xlu2 %2285, %v3464_v49   ;;  %v1919_v6 = vadd.f32 %v3534_v5, %v1918_v27 }
 0x3cf   :  { %2282 = vset.pattern.permute.xlu1 %v2472_v41  ;;  %v1814_v51 = vsel %vm1808_vm1, %v1797_v8, %v1763_v59  ;;  %v1967_v22 = vld [vmem:[#allocation2 + $0x20] sm:$0xff] }
 0x3d0   :  { %1747 = vperm.xlu1 %2282, %v3450_v36   ;;  %1830 = vst.msk [vmem:[#allocation2 + $0x28] sm:$0xff] %vm54_vm0, %v1814_v51  ;;  %2216 = vmatmul.msk.f32.gmra.mxu3 %vm54_vm0, %v1967_v22  ;;  %v1724_v16 = vpop.permute.xlu2 %1723 }
 0x3d1   :  { %v1765_v30 = vmul.f32 %v1724_v16, %v1411_v3 }
 0x3d2   :  { %v1414_v7 = vpop.f32.mrf.mxu1 }
 0x3d3   :  { %v1766_v56 = vmul.f32 %v1728_v46, %v1414_v7 }
 0x3d5   :  { %v1471_v57 = vpop.permute.xlu1 %1470  ;;  %v1921_v28 = vpop.f32.mrf.mxu2 }
 0x3d6   :  { %2288 = vset.pattern.permute.xlu2 %v2474_v62  ;;  %v1524_v33 = vmul.f32 %v1471_v57, %v1408_v20  ;;  %v1922_v51 = vadd.f32 %v3534_v5, %v1921_v28  ;;  %v1656_v57 = vpop.permute.xlu0 %1655 }
 0x3d7   :  { %1595 = vperm.xlu2 %2288, %v1368_v21   ;;  %v1968_v36 = vld [vmem:[#allocation2 + $0x28] sm:$0xff] }
 0x3d8   :  { %2284 = vset.pattern.permute.xlu1 %v2474_v62  ;;  %2217 = vmatmul.msk.f32.gmra.mxu3 %vm54_vm0, %v1968_v36  ;;  %v1604_v62 = vmul.f32 %v1560_v55, %v1408_v20  ;;  %v1526_v55 = vmul.f32 %v1481_v31, %v1414_v7 }
 0x3d9   :  { %1591 = vperm.xlu1 %2284, %v3464_v49  }
 0x3da   :  { %v1781_v2 = vsel %vm1774_vm8, %v1524_v33, %v1604_v62  ;;  %v1648_v10 = vpop.permute.xlu2 %1647  ;;  %v1417_v25 = vpop.f32.mrf.mxu1 }
 0x3dd   :  { %v1924_v62 = vpop.f32.mrf.mxu2 }
 0x3df   :  { %2290 = vset.pattern.permute.xlu2 %v2472_v41  ;;  %v1640_v54 = vpop.permute.xlu1 %1639 }
 0x3e0   :  { %1755 = vperm.xlu2 %2290, %v1368_v21   ;;  %v2048_v49 = vpop.f32.mrf.mxu3  ;;  %v1684_v52 = vmul.f32 %v1640_v54, %v1408_v20 }
 0x3e1   :  { %2287 = vset.pattern.permute.xlu1 %v2473_v19  ;;  %v2096_v13 = vadd.f32 %v2048_v49, %v1916_v12  ;;  %v1525_v19 = vmul.f32 %v1476_v11, %v1411_v3 }
 0x3e2   :  { %1515 = vperm.xlu1 %2287, %v1368_v21   ;;  %v1798_v38 = vsel %vm1791_vm9, %v1781_v2, %v1684_v52  ;;  %v1652_v14 = vpop.permute.xlu2 %1651  ;;  %v1420_v22 = vpop.f32.mrf.mxu1 }
 0x3e3   :  { %2112 = vst.msk [vmem:[%s3676_s7] sm:$0xff] %vm54_vm0, %v2096_v13  ;;  %v1815_v41 = vsel %vm1808_vm1, %v1798_v38, %v1764_v37  ;;  %v1782_v15 = vsel %vm1774_vm8, %v1525_v19, %v1605_v63  ;;  %v1687_v59 = vmul.f32 %v1652_v14, %v1417_v25  ;;  %v1688_v33 = vmul.f32 %v1656_v57, %v1420_v22  ;;  %v1496_v38 = vpop.permute.xlu0 %1495 }
 0x3e4   :  { %1831 = vst.msk [vmem:[#allocation2 + $0x30] sm:$0xff] %vm54_vm0, %v1815_v41  ;;  %v1925_v37 = vadd.f32 %v3534_v5, %v1924_v62 }
 0x3e5   :  { %v1927_v57 = vpop.f32.mrf.mxu2 }
 0x3e7   :  { %v1644_v48 = vpop.permute.xlu1 %1643 }
 0x3e8   :  { %v1685_v32 = vmul.f32 %v1644_v48, %v1411_v3 }
 0x3ea   :  { %2289 = vset.pattern.permute.xlu1 %v2471_v23  ;;  %v1799_v50 = vsel %vm1791_vm9, %v1782_v15, %v1685_v32  ;;  %v1686_v23 = vmul.f32 %v1648_v10, %v1414_v7  ;;  %v1423_v2 = vpop.f32.mrf.mxu1 }
 0x3eb   :  { %1675 = vperm.xlu1 %2289, %v1368_v21   ;;  %v1816_v17 = vsel %vm1808_vm1, %v1799_v50, %v1765_v30  ;;  %v1969_v35 = vld [vmem:[#allocation2 + $0x30] sm:$0xff]  ;;  %v1491_v45 = vpop.permute.xlu2 %1490  ;;  %v1529_v63 = vmul.f32 %v1496_v38, %v1423_v2 }
 0x3ec   :  { %1832 = vst.msk [vmem:[#allocation2 + $0x38] sm:$0xff] %vm54_vm0, %v1816_v17  ;;  %2218 = vmatmul.msk.f32.gmra.mxu3 %vm54_vm0, %v1969_v35  ;;  %v1528_v40 = vmul.f32 %v1491_v45, %v1420_v22 }
 0x3f1   :  { %v1568_v0 = vpop.permute.xlu1 %1567 }
 0x3f2   :  { %v1606_v60 = vmul.f32 %v1568_v0, %v1414_v7  ;;  %v1426_v0 = vpop.f32.mrf.mxu1 }
 0x3f3   :  { %v1970_v53 = vld [vmem:[#allocation2 + $0x38] sm:$0xff] }
 0x3f4   :  { %v1783_v42 = vsel %vm1774_vm8, %v1526_v55, %v1606_v60  ;;  %2219 = vmatmul.msk.f32.gmra.mxu3 %vm54_vm0, %v1970_v53  ;;  %v1576_v34 = vpop.permute.xlu2 %1575  ;;  %v1584_v55 = vpop.permute.xlu0 %1583 }
 0x3f5   :  { %v1800_v1 = vsel %vm1791_vm9, %v1783_v42, %v1686_v23  ;;  %v1608_v11 = vmul.f32 %v1576_v34, %v1420_v22  ;;  %v1610_v23 = vmul.f32 %v1584_v55, %v1426_v0 }
 0x3f6   :  { %v1817_v61 = vsel %vm1808_vm1, %v1800_v1, %v1766_v56 }
 0x3f7   :  { %1833 = vst.msk [vmem:[#allocation2 + $0x40] sm:$0xff] %vm54_vm0, %v1817_v61  ;;  %v1785_v12 = vsel %vm1774_vm8, %v1528_v40, %v1608_v11 }
 0x3f8   :  { %v1802_v49 = vsel %vm1791_vm9, %v1785_v12, %v1688_v33  ;;  %v1928_v33 = vadd.f32 %v3534_v5, %v1927_v57 }
 0x3fa   :  { %v1486_v9 = vpop.permute.xlu1 %1485 }
 0x3fb   :  { %v1527_v18 = vmul.f32 %v1486_v9, %v1417_v25 }
 0x3fc   :  { %v1580_v43 = vpop.permute.xlu2 %1579 }
 0x3fd   :  { %v1609_v3 = vmul.f32 %v1580_v43, %v1423_v2 }
 0x3fe   :  { %v1971_v47 = vld [vmem:[#allocation2 + $0x40] sm:$0xff] }
 0x3ff   :  { %2220 = vmatmul.msk.f32.gmra.mxu3 %vm54_vm0, %v1971_v47  ;;  %v1786_v15 = vsel %vm1774_vm8, %v1529_v63, %v1609_v3 }
 0x401   :  { %v2051_v26 = vpop.f32.mrf.mxu3 }
 0x402   :  { %v2097_v58 = vadd.f32 %v2051_v26, %v1919_v6  ;;  %v1429_v6 = vpop.f32.mrf.mxu1 }
 0x403   :  { %v1572_v24 = vpop.permute.xlu1 %1571 }
 0x404   :  { %2113 = vst.msk [vmem:[%s3676_s7 + $0x8] sm:$0xff] %vm54_vm0, %v2097_v58  ;;  %v1607_v39 = vmul.f32 %v1572_v24, %v1417_v25  ;;  %v1668_v58 = vpop.permute.xlu0 %1667 }
 0x405   :  { %v1740_v31 = vpop.permute.xlu2 %1739 }
 0x406   :  { %v1784_v4 = vsel %vm1774_vm8, %v1527_v18, %v1607_v39  ;;  %v1769_v30 = vmul.f32 %v1740_v31, %v1423_v2  ;;  %v1691_v39 = vmul.f32 %v1668_v58, %v1429_v6 }
 0x407   :  { %v1801_v29 = vsel %vm1791_vm9, %v1784_v4, %v1687_v59 }
 0x40d   :  { %v1732_v44 = vpop.permute.xlu1 %1731  ;;  %v1744_v7 = vpop.permute.xlu2 %1743 }
 0x40e   :  { %v1767_v8 = vmul.f32 %v1732_v44, %v1417_v25  ;;  %v1770_v42 = vmul.f32 %v1744_v7, %v1426_v0  ;;  %v1432_v44 = vpop.f32.mrf.mxu1 }
 0x410   :  { %v1818_v21 = vsel %vm1808_vm1, %v1801_v29, %v1767_v8  ;;  %v1752_v8 = vpop.permute.xlu0 %1751 }
 0x411   :  { %1834 = vst.msk [vmem:[#allocation2 + $0x48] sm:$0xff] %vm54_vm0, %v1818_v21 }
 0x412   :  { %v2054_v36 = vpop.f32.mrf.mxu3 }
 0x413   :  { %v2098_v20 = vadd.f32 %v2054_v36, %v1922_v51  ;;  %v1772_v36 = vmul.f32 %v1752_v8, %v1432_v44 }
 0x415   :  { %2114 = vst.msk [vmem:[%s3676_s7 + $0x10] sm:$0xff] %vm54_vm0, %v2098_v20  ;;  %v1736_v16 = vpop.permute.xlu1 %1735 }
 0x416   :  { %v1768_v54 = vmul.f32 %v1736_v16, %v1420_v22  ;;  %v1588_v61 = vpop.permute.xlu2 %1587 }
 0x417   :  { %v1611_v24 = vmul.f32 %v1588_v61, %v1429_v6 }
 0x418   :  { %v1819_v52 = vsel %vm1808_vm1, %v1802_v49, %v1768_v54  ;;  %v1972_v13 = vld [vmem:[#allocation2 + $0x48] sm:$0xff]  ;;  %v1930_v49 = vpop.f32.mrf.mxu2 }
 0x419   :  { %1835 = vst.msk [vmem:[#allocation2 + $0x50] sm:$0xff] %vm54_vm0, %v1819_v52  ;;  %2221 = vmatmul.msk.f32.gmra.mxu3 %vm54_vm0, %v1972_v13  ;;  %v1435_v13 = vpop.f32.mrf.mxu1 }
 0x41c   :  { %v2057_v41 = vpop.f32.mrf.mxu3 }
 0x41d   :  { %v2099_v19 = vadd.f32 %v2057_v41, %v1925_v37  ;;  %v1931_v37 = vadd.f32 %v3534_v5, %v1930_v49 }
 0x41e   :  { %v1660_v48 = vpop.permute.xlu1 %1659 }
 0x41f   :  { %2115 = vst.msk [vmem:[%s3676_s7 + $0x18] sm:$0xff] %vm54_vm0, %v2099_v19  ;;  %v1689_v32 = vmul.f32 %v1660_v48, %v1423_v2  ;;  %v1511_v26 = vpop.permute.xlu2 %1510 }
 0x420   :  { %v1973_v10 = vld [vmem:[#allocation2 + $0x50] sm:$0xff]  ;;  %v1532_v22 = vmul.f32 %v1511_v26, %v1432_v44 }
 0x421   :  { %v1803_v50 = vsel %vm1791_vm9, %v1786_v15, %v1689_v32  ;;  %2222 = vmatmul.msk.f32.gmra.mxu3 %vm54_vm0, %v1973_v10 }
 0x422   :  { %v1820_v17 = vsel %vm1808_vm1, %v1803_v50, %v1769_v30  ;;  %v1933_v50 = vpop.f32.mrf.mxu2 }
 0x423   :  { %1836 = vst.msk [vmem:[#allocation2 + $0x58] sm:$0xff] %vm54_vm0, %v1820_v17  ;;  %v1934_v17 = vadd.f32 %v3534_v5, %v1933_v50 }
 0x427   :  { %v1501_v35 = vpop.permute.xlu1 %1500 }
 0x428   :  { %v1530_v60 = vmul.f32 %v1501_v35, %v1426_v0  ;;  %v1672_v59 = vpop.permute.xlu2 %1671 }
 0x429   :  { %v1692_v11 = vmul.f32 %v1672_v59, %v1432_v44 }
 0x42a   :  { %v1974_v46 = vld [vmem:[#allocation2 + $0x58] sm:$0xff]  ;;  %v1787_v53 = vsel %vm1774_vm8, %v1530_v60, %v1610_v23 }
 0x42b   :  { %2223 = vmatmul.msk.f32.gmra.mxu3 %vm54_vm0, %v1974_v46  ;;  %v1936_v46 = vpop.f32.mrf.mxu2 }
 0x430   :  { %v1664_v56 = vpop.permute.xlu1 %1663 }
 0x431   :  { %v1690_v14 = vmul.f32 %v1664_v56, %v1426_v0  ;;  %v1596_v12 = vpop.permute.xlu2 %1595  ;;  %v1937_v0 = vadd.f32 %v3534_v5, %v1936_v46 }
 0x432   :  { %v1613_v41 = vmul.f32 %v1596_v12, %v1435_v13 }
 0x433   :  { %v1804_v1 = vsel %vm1791_vm9, %v1787_v53, %v1690_v14  ;;  %v1939_v23 = vpop.f32.mrf.mxu2 }
 0x434   :  { %v1821_v27 = vsel %vm1808_vm1, %v1804_v1, %v1770_v42  ;;  %v1940_v56 = vadd.f32 %v3534_v5, %v1939_v23 }
 0x435   :  { %1837 = vst.msk [vmem:[#allocation2 + $0x60] sm:$0xff] %vm54_vm0, %v1821_v27 }
 0x439   :  { %v1506_v9 = vpop.permute.xlu1 %1505 }
 0x43a   :  { %v1531_v47 = vmul.f32 %v1506_v9, %v1429_v6  ;;  %v1756_v38 = vpop.permute.xlu2 %1755 }
 0x43b   :  { %v1773_v48 = vmul.f32 %v1756_v38, %v1435_v13  ;;  %v1942_v53 = vpop.f32.mrf.mxu2 }
 0x43c   :  { %v1975_v45 = vld [vmem:[#allocation2 + $0x60] sm:$0xff]  ;;  %v1788_v25 = vsel %vm1774_vm8, %v1531_v47, %v1611_v24  ;;  %v1943_v1 = vadd.f32 %v3534_v5, %v1942_v53 }
 0x43d   :  { %2224 = vmatmul.msk.f32.gmra.mxu3 %vm54_vm0, %v1975_v45  ;;  %v1805_v28 = vsel %vm1791_vm9, %v1788_v25, %v1691_v39 }
 0x442   :  { %v1748_v34 = vpop.permute.xlu1 %1747 }
 0x443   :  { %v1771_v18 = vmul.f32 %v1748_v34, %v1429_v6  ;;  %v1945_v9 = vpop.f32.mrf.mxu2 }
 0x444   :  { %v1946_v6 = vadd.f32 %v3534_v5, %v1945_v9 }
 0x445   :  { %v1822_v4 = vsel %vm1808_vm1, %v1805_v28, %v1771_v18 }
 0x446   :  { %1838 = vst.msk [vmem:[#allocation2 + $0x68] sm:$0xff] %vm54_vm0, %v1822_v4 }
 0x44b   :  { %v1592_v51 = vpop.permute.xlu1 %1591  ;;  %v1948_v26 = vpop.f32.mrf.mxu2 }
 0x44c   :  { %v1612_v29 = vmul.f32 %v1592_v51, %v1432_v44  ;;  %v1949_v58 = vadd.f32 %v3534_v5, %v1948_v26 }
 0x44d   :  { %v1976_v21 = vld [vmem:[#allocation2 + $0x68] sm:$0xff] }
 0x44e   :  { %v1789_v40 = vsel %vm1774_vm8, %v1532_v22, %v1612_v29  ;;  %2225 = vmatmul.msk.f32.gmra.mxu3 %vm54_vm0, %v1976_v21 }
 0x44f   :  { %v1806_v20 = vsel %vm1791_vm9, %v1789_v40, %v1692_v11 }
 0x450   :  { %v1823_v43 = vsel %vm1808_vm1, %v1806_v20, %v1772_v36 }
 0x451   :  { %1839 = vst.msk [vmem:[#allocation2 + $0x70] sm:$0xff] %vm54_vm0, %v1823_v43 }
 0x453   :  { %v2060_v62 = vpop.f32.mrf.mxu3  ;;  %v1951_v39 = vpop.f32.mrf.mxu2 }
 0x454   :  { %v1516_v16 = vpop.permute.xlu1 %1515  ;;  %v2100_v54 = vadd.f32 %v2060_v62, %v1928_v33  ;;  %v1952_v34 = vadd.f32 %v3534_v5, %v1951_v39 }
 0x455   :  { %v1533_v2 = vmul.f32 %v1516_v16, %v1435_v13 }
 0x456   :  { %2116 = vst.msk [vmem:[%s3676_s7 + $0x20] sm:$0xff] %vm54_vm0, %v2100_v54 }
 0x457   :  { %v1790_v32 = vsel %vm1774_vm8, %v1533_v2, %v1613_v41 }
 0x458   :  { %v1977_v52 = vld [vmem:[#allocation2 + $0x70] sm:$0xff] }
 0x459   :  { %2226 = vmatmul.msk.f32.gmra.mxu3 %vm54_vm0, %v1977_v52 }
 0x45b   :  { %v2063_v19 = vpop.f32.mrf.mxu3  ;;  %v1954_v4 = vpop.f32.mrf.mxu2 }
 0x45c   :  { %v2101_v63 = vadd.f32 %v2063_v19, %v1931_v37  ;;  %v1955_v59 = vadd.f32 %v3534_v5, %v1954_v4 }
 0x45d   :  { %v1676_v3 = vpop.permute.xlu1 %1675 }
 0x45e   :  { %v1693_v31 = vmul.f32 %v1676_v3, %v1435_v13  ;;  %2117 = vst.msk [vmem:[%s3676_s7 + $0x28] sm:$0xff] %vm54_vm0, %v2101_v63 }
 0x460   :  { %v1807_v15 = vsel %vm1791_vm9, %v1790_v32, %v1693_v31 }
 0x461   :  { %v1824_v30 = vsel %vm1808_vm1, %v1807_v15, %v1773_v48 }
 0x462   :  { %1840 = vst.msk [vmem:[#allocation2 + $0x78] sm:$0xff] %vm54_vm0, %v1824_v30 }
 0x463   :  { %v1957_v51 = vpop.f32.mrf.mxu2 }
 0x464   :  { %v1958_v22 = vadd.f32 %v3534_v5, %v1957_v51 }
 0x469   :  { %v1978_v10 = vld [vmem:[#allocation2 + $0x78] sm:$0xff] }
 0x46a   :  { %2227 = vmatmul.msk.f32.gmra.mxu3 %vm54_vm0, %v1978_v10 }
 0x46b   :  { %v1960_v21 = vpop.f32.mrf.mxu2 }
 0x46c   :  { %v1961_v57 = vadd.f32 %v3534_v5, %v1960_v21 }
 0x46f   :  { %v2066_v35 = vpop.f32.mrf.mxu3 }
 0x470   :  { %v2102_v7 = vadd.f32 %v2066_v35, %v1934_v17 }
 0x472   :  { %2118 = vst.msk [vmem:[%s3676_s7 + $0x30] sm:$0xff] %vm54_vm0, %v2102_v7 }
 0x477   :  { %v2069_v55 = vpop.f32.mrf.mxu3 }
 0x478   :  { %v2103_v60 = vadd.f32 %v2069_v55, %v1937_v0 }
 0x47a   :  { %2119 = vst.msk [vmem:[%s3676_s7 + $0x38] sm:$0xff] %vm54_vm0, %v2103_v60 }
 0x482   :  { %v2072_v14 = vpop.f32.mrf.mxu3 }
 0x483   :  { %v2104_v42 = vadd.f32 %v2072_v14, %v1940_v56 }
 0x485   :  { %2120 = vst.msk [vmem:[%s3676_s7 + $0x40] sm:$0xff] %vm54_vm0, %v2104_v42 }
 0x49c   :  { %v2075_v61 = vpop.f32.mrf.mxu3 }
 0x49d   :  { %v2105_v27 = vadd.f32 %v2075_v61, %v1943_v1 }
 0x49f   :  { %2121 = vst.msk [vmem:[%s3676_s7 + $0x48] sm:$0xff] %vm54_vm0, %v2105_v27 }
 0x4a4   :  { %v2078_v45 = vpop.f32.mrf.mxu3 }
 0x4a5   :  { %v2106_v47 = vadd.f32 %v2078_v45, %v1946_v6 }
 0x4a7   :  { %2122 = vst.msk [vmem:[%s3676_s7 + $0x50] sm:$0xff] %vm54_vm0, %v2106_v47 }
 0x4ae   :  { %v2081_v24 = vpop.f32.mrf.mxu3 }
 0x4af   :  { %v2107_v25 = vadd.f32 %v2081_v24, %v1949_v58 }
 0x4b1   :  { %2123 = vst.msk [vmem:[%s3676_s7 + $0x58] sm:$0xff] %vm54_vm0, %v2107_v25 }
 0x4c0   :  { %v2084_v18 = vpop.f32.mrf.mxu3 }
 0x4c1   :  { %v2108_v28 = vadd.f32 %v2084_v18, %v1952_v34 }
 0x4c3   :  { %2124 = vst.msk [vmem:[%s3676_s7 + $0x60] sm:$0xff] %vm54_vm0, %v2108_v28 }
 0x4d1   :  { %v2087_v44 = vpop.f32.mrf.mxu3 }
 0x4d2   :  { %v2109_v8 = vadd.f32 %v2087_v44, %v1955_v59 }
 0x4d4   :  { %2125 = vst.msk [vmem:[%s3676_s7 + $0x68] sm:$0xff] %vm54_vm0, %v2109_v8 }
 0x4dc   :  { %v2090_v29 = vpop.f32.mrf.mxu3 }
 0x4dd   :  { %v2110_v11 = vadd.f32 %v2090_v29, %v1958_v22 }
 0x4df   :  { %2126 = vst.msk [vmem:[%s3676_s7 + $0x70] sm:$0xff] %vm54_vm0, %v2110_v11 }
 0x4ed   :  { %v2093_v36 = vpop.f32.mrf.mxu3 }
 0x4ee   :  { %v2111_v40 = vadd.f32 %v2093_v36, %v1961_v57 }
 0x4f0   :  { %2127 = vst.msk [vmem:[%s3676_s7 + $0x78] sm:$0xff] %vm54_vm0, %v2111_v40 }

</bundles_post_ra>
